<compile_context>
chip_gen: v7x
topology: tpu7x:2x2x1
jax: 0.10.0
libtpu: 0.0.40
codegen_flags: <defaults>
</compile_context>

<pallas_src>
import functools

import jax
import jax.numpy as jnp
from jax.experimental import pallas as pl
from jax.experimental.pallas import tpu as pltpu

BIG = 1e9  # "infinity" for uninitialized travel times


def _round_up(x, k):
    return (x + k - 1) // k * k


# ----------------------------------------------------------------------------
# Fused kernel: eikonal solve (replaces eik2d_cpp.forward) + bilinear readout
# ----------------------------------------------------------------------------
def _eikonal_fused_kernel(src_ref, f_ref, gx_ref, gy_ref, u_ref, t_ref, *,
                          m, n, mp, np_, pp, qc, h, tol, max_iters,
                          chunk_iters, inv_dxdy):
    m1 = src_ref[0]
    n1 = src_ref[1]

    f = f_ref[...]                        # (mp, np_) padded slowness
    fh = f * h
    fh2 = fh * fh                         # (f*h)^2        (loop invariant)
    fh2x2 = fh2 + fh2                     # 2*(f*h)^2      (loop invariant)

    row = jax.lax.broadcasted_iota(jnp.int32, (mp, np_), 0)
    col = jax.lax.broadcasted_iota(jnp.int32, (mp, np_), 1)

    # Guard rows/cols (>=1 of each guaranteed by the wrapper padding) stay at BIG,
    # so the wrapped rolls below see "infinity" past the logical boundary and no
    # boundary selects are needed inside the sweep.
    pad_mask = (row >= m) | (col >= n)
    src_mask = (row == m1) & (col == n1)

    def step(u):
        # Neighbour shifts on the XLU (jnp.roll semantics); positive shifts only.
        u_im1 = pltpu.roll(u, 1, 0)            # u[i-1, :]
        u_ip1 = pltpu.roll(u, mp - 1, 0)       # u[i+1, :]
        u_jm1 = pltpu.roll(u, 1, 1)            # u[:, j-1]
        u_jp1 = pltpu.roll(u, np_ - 1, 1)      # u[:, j+1]
        a = jnp.minimum(u_im1, u_ip1)
        b = jnp.minimum(u_jm1, u_jp1)

        # Godunov upwind update for |grad u| = f * h (grid units)
        diff = a - b
        d2 = diff * diff
        cand_far = jnp.minimum(a, b) + fh
        disc = jnp.maximum(fh2x2 - d2, 0.0)
        cand_near = 0.5 * (a + b + jnp.sqrt(disc))
        cand = jnp.where(d2 >= fh2, cand_far, cand_near)
        u_new = jnp.minimum(u, cand)       # source cell stays 0 automatically
        return jnp.where(pad_mask, BIG, u_new)   # keep guard cells at "infinity"

    u0 = jnp.where(src_mask, 0.0, BIG).astype(jnp.float32)

    def chunk(carry):
        it, u, _ = carry
        for _ in range(chunk_iters - 1):   # fully unrolled inner sweeps
            u = step(u)
        u_prev = u                         # delta over the last sweep only
        u = step(u)
        delta = jnp.max(jnp.abs(u - u_prev))
        return it + chunk_iters, u, delta

    def cond(carry):
        it, _, delta = carry
        return jnp.logical_and(it < max_iters, delta > tol)

    _, u, _ = jax.lax.while_loop(cond, chunk,
                                 (jnp.int32(0), u0, jnp.float32(BIG)))

    u_ref[...] = u

    # ------------------------------------------------------------------ readout
    # Chunked over query points so one-hot buffers are O(np_*qc), not O(np_*pp).
    for start in range(0, pp, qc):
        sz = min(qc, pp - start)           # always a multiple of 128
        gx = gx_ref[:, start:start + sz]   # (1, sz) lane-dense query coords
        gy = gy_ref[:, start:start + sz]

        x_up = jnp.ceil(gx)
        x_lo = jnp.floor(gx)
        y_up = jnp.ceil(gy)
        y_lo = jnp.floor(gy)

        # Fused column gather: one MXU pass for both y_up and y_lo one-hots.
        y_cat = jnp.concatenate([y_up, y_lo], axis=1).astype(jnp.int32)  # (1, 2sz)
        col_iota = jax.lax.broadcasted_iota(jnp.int32, (np_, 2 * sz), 0)
        c_onehot = (col_iota == y_cat).astype(jnp.float32)
        cols = jnp.dot(u, c_onehot, preferred_element_type=jnp.float32)  # (mp, 2sz)
        cols_up = cols[:, :sz]             # u[:, y_up]   (tile-aligned slice)
        cols_lo = cols[:, sz:]             # u[:, y_lo]

        # Row select: one-hot multiply + sublane reduce -> (1, sz)
        row_iota = jax.lax.broadcasted_iota(jnp.int32, (mp, sz), 0)
        r_up = (row_iota == x_up.astype(jnp.int32)).astype(jnp.float32)
        r_lo = (row_iota == x_lo.astype(jnp.int32)).astype(jnp.float32)

        f_x2y2 = jnp.sum(cols_up * r_up, axis=0, keepdims=True)   # u[x_up, y_up]
        f_x2y1 = jnp.sum(cols_lo * r_up, axis=0, keepdims=True)   # u[x_up, y_lo]
        f_x1y1 = jnp.sum(cols_lo * r_lo, axis=0, keepdims=True)   # u[x_lo, y_lo]
        # f_x1y2 (u[x_lo, y_up]) is unused in the reference formula -> not computed.

        xh = x_up - gx
        xl = gx - x_lo
        yh = y_up - gy
        yl = gy - y_lo

        # NOTE: reproduces the original torch formula exactly (f_x2y1 appears twice).
        t = (xh * yh * f_x1y1 + xh * yl * f_x2y1
             + xl * yh * f_x2y1 + xl * yl * f_x2y2) * inv_dxdy
        t_ref[:, start:start + sz] = t


def eikonal_forward(f2d, m1, n1, gridx, gridy, *, h, tol, dx, dy):
    m, n = f2d.shape
    p = gridx.shape[0]
    # Pad so there is always >= 1 BIG guard row and column (rolls wrap into them).
    mp = _round_up(m + 1, 8)
    np_ = _round_up(n + 1, 128)
    pp = _round_up(p, 128)
    qc = min(pp, 512)                      # readout query-point chunk

    f_pad = jnp.pad(f2d.astype(jnp.float32), ((0, mp - m), (0, np_ - n)),
                    constant_values=1.0)
    gx = jnp.pad(gridx.astype(jnp.float32), (0, pp - p)).reshape(1, pp)
    gy = jnp.pad(gridy.astype(jnp.float32), (0, pp - p)).reshape(1, pp)
    src = jnp.array([m1, n1], dtype=jnp.int32)

    chunk_iters = 16
    max_iters = _round_up(8 * (m + n), chunk_iters)   # hard cap; tol exits earlier

    kernel = functools.partial(
        _eikonal_fused_kernel, m=m, n=n, mp=mp, np_=np_, pp=pp, qc=qc,
        h=float(h), tol=float(tol), max_iters=int(max_iters),
        chunk_iters=int(chunk_iters), inv_dxdy=float(1.0 / (dx * dy)))

    # Generation-aware VMEM limit: always set explicitly (v5e default is only
    # ~16 MiB) and never exceed ~85% of the physical capacity (64 MiB on v7x).
    est_bytes = 4 * (12 * mp * np_ + (2 * np_ + 8 * mp) * qc + 4 * pp) + (1 << 20)
    try:
        cap = int(getattr(pltpu.get_tpu_info(), "vmem_capacity_bytes", 64 << 20))
    except Exception:
        cap = 64 << 20
    cap = (cap * 85) // 100
    vmem_limit = int(min(cap, max(int(est_bytes * 1.2), 16 << 20)))

    u_pad, t_pad = pl.pallas_call(
        kernel,
        out_shape=(jax.ShapeDtypeStruct((mp, np_), jnp.float32),
                   jax.ShapeDtypeStruct((1, pp), jnp.float32)),
        in_specs=[pl.BlockSpec(memory_space=pltpu.MemorySpace.SMEM),   # src (2,)
                  pl.BlockSpec(memory_space=pltpu.MemorySpace.VMEM),   # f  (mp, np_)
                  pl.BlockSpec(memory_space=pltpu.MemorySpace.VMEM),   # gx (1, pp)
                  pl.BlockSpec(memory_space=pltpu.MemorySpace.VMEM)],  # gy (1, pp)
        out_specs=(pl.BlockSpec(memory_space=pltpu.MemorySpace.VMEM),
                   pl.BlockSpec(memory_space=pltpu.MemorySpace.VMEM)),
        compiler_params=pltpu.CompilerParams(vmem_limit_bytes=vmem_limit),
    )(src, f_pad, gx, gy)

    u = u_pad[:m, :n].reshape(m * n)
    t = t_pad[0, :p]
    return u, t


# ----------------------------------------------------------------------------
# Module wrapper (mirrors adtomo.model.Eikonal2D)
# ----------------------------------------------------------------------------
class Eikonal2D:
    def __init__(self, m, n, h, tol, num_event, num_station, dx, dy,
                 f=None, station_loc=None, event_loc=None):
        self.m, self.n, self.h, self.tol = m, n, h, tol
        self.num_event, self.num_station = num_event, num_station
        self.dx, self.dy = dx, dy
        if f is None:
            # torch.nn.Parameter(torch.ones(m * n)) -> deterministic ones
            self.f = jnp.ones((m * n,), dtype=jnp.float32)
        else:
            self.f = jnp.asarray(f, jnp.float32)
        # event_loc / station_loc embeddings are parameters never used by forward()
        self.event_loc = None if event_loc is None else jnp.asarray(event_loc, jnp.float32)
        self.station_loc = None if station_loc is None else jnp.asarray(station_loc, jnp.float32)
        print("Initialized Eikonal2D object")

    def forward(self, m1, n1, gridx, gridy):
        # TODO(synk): the reference calls an opaque C++ fast-sweeping eikonal
        # solver; here it is approximated by Jacobi Godunov-upwind sweeps with a
        # max|du| <= tol convergence check (capped at 8*(m+n) sweeps), in f32.
        # TODO(synk): batching multiple events across a parallel grid axis (2 TCs
        # on v7x) is possible but changes the per-event call pattern of forward().
        u, t = eikonal_forward(self.f.reshape(self.m, self.n), m1, n1,
                               jnp.asarray(gridx, jnp.float32),
                               jnp.asarray(gridy, jnp.float32),
                               h=self.h, tol=self.tol, dx=self.dx, dy=self.dy)
        self.u = u
        return t


if __name__ == "__main__":
    m, n = 16, 16
    h = 1.0
    tol = 1e-6
    num_event, num_station = 2, 4
    dx = dy = 1.0

    model = Eikonal2D(m, n, h, tol, num_event, num_station, dx, dy)

    key = jax.random.PRNGKey(0)
    kx, ky = jax.random.split(key)
    P = 8
    gridx = jax.random.uniform(kx, (P,), minval=0.0, maxval=m - 1.001)
    gridy = jax.random.uniform(ky, (P,), minval=0.0, maxval=n - 1.001)

    m1, n1 = 5, 7   # eikonal point-source grid indices

    t_xyz = model.forward(m1, n1, gridx, gridy)
    t_xyz = jax.block_until_ready(t_xyz)

    assert t_xyz.shape == (P,)
    assert bool(jnp.all(jnp.isfinite(t_xyz)))
    assert model.u.shape == (m * n,)
    assert bool(jnp.all(jnp.isfinite(model.u)))
    print("KERNEL_OK")
</pallas_src>

<mosaic_0001>
module attributes {stable_mosaic.version = 11 : i64} {
  func.func @_eikonal_fused_kernel(%arg0: memref<2xi32, #tpu.memory_space<smem>>, %arg1: memref<24x128xf32, #tpu.memory_space<vmem>>, %arg2: memref<1x128xf32, #tpu.memory_space<vmem>>, %arg3: memref<1x128xf32, #tpu.memory_space<vmem>>, %arg4: memref<24x128xf32, #tpu.memory_space<vmem>>, %arg5: memref<1x128xf32, #tpu.memory_space<vmem>>) attributes {dimension_semantics = [], scalar_prefetch = 0 : i64, scratch_operands = 0 : i64, tpu.core_type = #tpu.core_type<tc>} {
    %c0 = arith.constant 0 : index
    %0 = memref.load %arg0[%c0] : memref<2xi32, #tpu.memory_space<smem>>
    %c1 = arith.constant 1 : index
    %1 = memref.load %arg0[%c1] : memref<2xi32, #tpu.memory_space<smem>>
    %c0_0 = arith.constant 0 : index
    %c0_1 = arith.constant 0 : index
    %2 = vector.load %arg1[%c0_0, %c0_1] : memref<24x128xf32, #tpu.memory_space<vmem>>, vector<24x128xf32>
    %cst = arith.constant 1.000000e+00 : f32
    %3 = vector.broadcast %cst : f32 to vector<24x128xf32>
    %4 = arith.mulf %2, %3 : vector<24x128xf32>
    %5 = arith.mulf %4, %4 : vector<24x128xf32>
    %6 = arith.addf %5, %5 : vector<24x128xf32>
    %7 = tpu.iota {dimensions = array<i32: 0>} : vector<24x128xi32>
    %8 = tpu.iota {dimensions = array<i32: 1>} : vector<24x128xi32>
    %c16_i32 = arith.constant 16 : i32
    %9 = vector.broadcast %c16_i32 : i32 to vector<24x128xi32>
    %10 = arith.cmpi sge, %7, %9 : vector<24x128xi32>
    %c16_i32_2 = arith.constant 16 : i32
    %11 = vector.broadcast %c16_i32_2 : i32 to vector<24x128xi32>
    %12 = arith.cmpi sge, %8, %11 : vector<24x128xi32>
    %13 = arith.ori %10, %12 : vector<24x128xi1>
    %14 = vector.broadcast %0 : i32 to vector<24x128xi32>
    %15 = arith.cmpi eq, %7, %14 : vector<24x128xi32>
    %16 = vector.broadcast %1 : i32 to vector<24x128xi32>
    %17 = arith.cmpi eq, %8, %16 : vector<24x128xi32>
    %18 = arith.andi %15, %17 : vector<24x128xi1>
    %cst_3 = arith.constant 0.000000e+00 : f32
    %cst_4 = arith.constant 1.000000e+09 : f32
    %19 = vector.broadcast %cst_3 : f32 to vector<24x128xf32>
    %20 = vector.broadcast %cst_4 : f32 to vector<24x128xf32>
    %21 = arith.select %18, %19, %20 : vector<24x128xi1>, vector<24x128xf32>
    %c0_i32 = arith.constant 0 : i32
    %cst_5 = arith.constant 1.000000e+09 : f32
    %22:3 = scf.while (%arg6 = %c0_i32, %arg7 = %21, %arg8 = %cst_5) : (i32, vector<24x128xf32>, f32) -> (i32, vector<24x128xf32>, f32) {
      %c256_i32 = arith.constant 256 : i32
      %78 = arith.cmpi slt, %arg6, %c256_i32 : i32
      %cst_19 = arith.constant 9.99999997E-7 : f32
      %79 = arith.cmpf ogt, %arg8, %cst_19 : f32
      %80 = arith.andi %78, %79 : i1
      scf.condition(%80) %arg6, %arg7, %arg8 : i32, vector<24x128xf32>, f32
    } do {
    ^bb0(%arg6: i32, %arg7: vector<24x128xf32>, %arg8: f32):
      %c1_i32 = arith.constant 1 : i32
      %78 = tpu.dynamic_rotate %arg7 by %c1_i32 dim 0 : vector<24x128xf32>, i32 -> vector<24x128xf32>
      %c23_i32 = arith.constant 23 : i32
      %79 = tpu.dynamic_rotate %arg7 by %c23_i32 dim 0 : vector<24x128xf32>, i32 -> vector<24x128xf32>
      %c1_i32_19 = arith.constant 1 : i32
      %80 = tpu.dynamic_rotate %arg7 by %c1_i32_19 dim 1 : vector<24x128xf32>, i32 -> vector<24x128xf32>
      %c127_i32 = arith.constant 127 : i32
      %81 = tpu.dynamic_rotate %arg7 by %c127_i32 dim 1 : vector<24x128xf32>, i32 -> vector<24x128xf32>
      %82 = arith.minimumf %78, %79 : vector<24x128xf32>
      %83 = arith.minimumf %80, %81 : vector<24x128xf32>
      %84 = arith.subf %82, %83 : vector<24x128xf32>
      %85 = arith.mulf %84, %84 : vector<24x128xf32>
      %86 = arith.minimumf %82, %83 : vector<24x128xf32>
      %87 = arith.addf %86, %4 : vector<24x128xf32>
      %88 = arith.subf %6, %85 : vector<24x128xf32>
      %cst_20 = arith.constant 0.000000e+00 : f32
      %89 = vector.broadcast %cst_20 : f32 to vector<24x128xf32>
      %90 = arith.maximumf %88, %89 : vector<24x128xf32>
      %91 = arith.addf %82, %83 : vector<24x128xf32>
      %92 = math.sqrt %90 : vector<24x128xf32>
      %93 = arith.addf %91, %92 : vector<24x128xf32>
      %cst_21 = arith.constant 5.000000e-01 : f32
      %94 = vector.broadcast %cst_21 : f32 to vector<24x128xf32>
      %95 = arith.mulf %94, %93 : vector<24x128xf32>
      %96 = arith.cmpf oge, %85, %5 : vector<24x128xf32>
      %97 = arith.select %96, %87, %95 : vector<24x128xi1>, vector<24x128xf32>
      %98 = arith.minimumf %arg7, %97 : vector<24x128xf32>
      %cst_22 = arith.constant 1.000000e+09 : f32
      %99 = vector.broadcast %cst_22 : f32 to vector<24x128xf32>
      %100 = arith.select %13, %99, %98 : vector<24x128xi1>, vector<24x128xf32>
      %c1_i32_23 = arith.constant 1 : i32
      %101 = tpu.dynamic_rotate %100 by %c1_i32_23 dim 0 : vector<24x128xf32>, i32 -> vector<24x128xf32>
      %c23_i32_24 = arith.constant 23 : i32
      %102 = tpu.dynamic_rotate %100 by %c23_i32_24 dim 0 : vector<24x128xf32>, i32 -> vector<24x128xf32>
      %c1_i32_25 = arith.constant 1 : i32
      %103 = tpu.dynamic_rotate %100 by %c1_i32_25 dim 1 : vector<24x128xf32>, i32 -> vector<24x128xf32>
      %c127_i32_26 = arith.constant 127 : i32
      %104 = tpu.dynamic_rotate %100 by %c127_i32_26 dim 1 : vector<24x128xf32>, i32 -> vector<24x128xf32>
      %105 = arith.minimumf %101, %102 : vector<24x128xf32>
      %106 = arith.minimumf %103, %104 : vector<24x128xf32>
      %107 = arith.subf %105, %106 : vector<24x128xf32>
      %108 = arith.mulf %107, %107 : vector<24x128xf32>
      %109 = arith.minimumf %105, %106 : vector<24x128xf32>
      %110 = arith.addf %109, %4 : vector<24x128xf32>
      %111 = arith.subf %6, %108 : vector<24x128xf32>
      %cst_27 = arith.constant 0.000000e+00 : f32
      %112 = vector.broadcast %cst_27 : f32 to vector<24x128xf32>
      %113 = arith.maximumf %111, %112 : vector<24x128xf32>
      %114 = arith.addf %105, %106 : vector<24x128xf32>
      %115 = math.sqrt %113 : vector<24x128xf32>
      %116 = arith.addf %114, %115 : vector<24x128xf32>
      %cst_28 = arith.constant 5.000000e-01 : f32
      %117 = vector.broadcast %cst_28 : f32 to vector<24x128xf32>
      %118 = arith.mulf %117, %116 : vector<24x128xf32>
      %119 = arith.cmpf oge, %108, %5 : vector<24x128xf32>
      %120 = arith.select %119, %110, %118 : vector<24x128xi1>, vector<24x128xf32>
      %121 = arith.minimumf %100, %120 : vector<24x128xf32>
      %cst_29 = arith.constant 1.000000e+09 : f32
      %122 = vector.broadcast %cst_29 : f32 to vector<24x128xf32>
      %123 = arith.select %13, %122, %121 : vector<24x128xi1>, vector<24x128xf32>
      %c1_i32_30 = arith.constant 1 : i32
      %124 = tpu.dynamic_rotate %123 by %c1_i32_30 dim 0 : vector<24x128xf32>, i32 -> vector<24x128xf32>
      %c23_i32_31 = arith.constant 23 : i32
      %125 = tpu.dynamic_rotate %123 by %c23_i32_31 dim 0 : vector<24x128xf32>, i32 -> vector<24x128xf32>
      %c1_i32_32 = arith.constant 1 : i32
      %126 = tpu.dynamic_rotate %123 by %c1_i32_32 dim 1 : vector<24x128xf32>, i32 -> vector<24x128xf32>
      %c127_i32_33 = arith.constant 127 : i32
      %127 = tpu.dynamic_rotate %123 by %c127_i32_33 dim 1 : vector<24x128xf32>, i32 -> vector<24x128xf32>
      %128 = arith.minimumf %124, %125 : vector<24x128xf32>
      %129 = arith.minimumf %126, %127 : vector<24x128xf32>
      %130 = arith.subf %128, %129 : vector<24x128xf32>
      %131 = arith.mulf %130, %130 : vector<24x128xf32>
      %132 = arith.minimumf %128, %129 : vector<24x128xf32>
      %133 = arith.addf %132, %4 : vector<24x128xf32>
      %134 = arith.subf %6, %131 : vector<24x128xf32>
      %cst_34 = arith.constant 0.000000e+00 : f32
      %135 = vector.broadcast %cst_34 : f32 to vector<24x128xf32>
      %136 = arith.maximumf %134, %135 : vector<24x128xf32>
      %137 = arith.addf %128, %129 : vector<24x128xf32>
      %138 = math.sqrt %136 : vector<24x128xf32>
      %139 = arith.addf %137, %138 : vector<24x128xf32>
      %cst_35 = arith.constant 5.000000e-01 : f32
      %140 = vector.broadcast %cst_35 : f32 to vector<24x128xf32>
      %141 = arith.mulf %140, %139 : vector<24x128xf32>
      %142 = arith.cmpf oge, %131, %5 : vector<24x128xf32>
      %143 = arith.select %142, %133, %141 : vector<24x128xi1>, vector<24x128xf32>
      %144 = arith.minimumf %123, %143 : vector<24x128xf32>
      %cst_36 = arith.constant 1.000000e+09 : f32
      %145 = vector.broadcast %cst_36 : f32 to vector<24x128xf32>
      %146 = arith.select %13, %145, %144 : vector<24x128xi1>, vector<24x128xf32>
      %c1_i32_37 = arith.constant 1 : i32
      %147 = tpu.dynamic_rotate %146 by %c1_i32_37 dim 0 : vector<24x128xf32>, i32 -> vector<24x128xf32>
      %c23_i32_38 = arith.constant 23 : i32
      %148 = tpu.dynamic_rotate %146 by %c23_i32_38 dim 0 : vector<24x128xf32>, i32 -> vector<24x128xf32>
      %c1_i32_39 = arith.constant 1 : i32
      %149 = tpu.dynamic_rotate %146 by %c1_i32_39 dim 1 : vector<24x128xf32>, i32 -> vector<24x128xf32>
      %c127_i32_40 = arith.constant 127 : i32
      %150 = tpu.dynamic_rotate %146 by %c127_i32_40 dim 1 : vector<24x128xf32>, i32 -> vector<24x128xf32>
      %151 = arith.minimumf %147, %148 : vector<24x128xf32>
      %152 = arith.minimumf %149, %150 : vector<24x128xf32>
      %153 = arith.subf %151, %152 : vector<24x128xf32>
      %154 = arith.mulf %153, %153 : vector<24x128xf32>
      %155 = arith.minimumf %151, %152 : vector<24x128xf32>
      %156 = arith.addf %155, %4 : vector<24x128xf32>
      %157 = arith.subf %6, %154 : vector<24x128xf32>
      %cst_41 = arith.constant 0.000000e+00 : f32
      %158 = vector.broadcast %cst_41 : f32 to vector<24x128xf32>
      %159 = arith.maximumf %157, %158 : vector<24x128xf32>
      %160 = arith.addf %151, %152 : vector<24x128xf32>
      %161 = math.sqrt %159 : vector<24x128xf32>
      %162 = arith.addf %160, %161 : vector<24x128xf32>
      %cst_42 = arith.constant 5.000000e-01 : f32
      %163 = vector.broadcast %cst_42 : f32 to vector<24x128xf32>
      %164 = arith.mulf %163, %162 : vector<24x128xf32>
      %165 = arith.cmpf oge, %154, %5 : vector<24x128xf32>
      %166 = arith.select %165, %156, %164 : vector<24x128xi1>, vector<24x128xf32>
      %167 = arith.minimumf %146, %166 : vector<24x128xf32>
      %cst_43 = arith.constant 1.000000e+09 : f32
      %168 = vector.broadcast %cst_43 : f32 to vector<24x128xf32>
      %169 = arith.select %13, %168, %167 : vector<24x128xi1>, vector<24x128xf32>
      %c1_i32_44 = arith.constant 1 : i32
      %170 = tpu.dynamic_rotate %169 by %c1_i32_44 dim 0 : vector<24x128xf32>, i32 -> vector<24x128xf32>
      %c23_i32_45 = arith.constant 23 : i32
      %171 = tpu.dynamic_rotate %169 by %c23_i32_45 dim 0 : vector<24x128xf32>, i32 -> vector<24x128xf32>
      %c1_i32_46 = arith.constant 1 : i32
      %172 = tpu.dynamic_rotate %169 by %c1_i32_46 dim 1 : vector<24x128xf32>, i32 -> vector<24x128xf32>
      %c127_i32_47 = arith.constant 127 : i32
      %173 = tpu.dynamic_rotate %169 by %c127_i32_47 dim 1 : vector<24x128xf32>, i32 -> vector<24x128xf32>
      %174 = arith.minimumf %170, %171 : vector<24x128xf32>
      %175 = arith.minimumf %172, %173 : vector<24x128xf32>
      %176 = arith.subf %174, %175 : vector<24x128xf32>
      %177 = arith.mulf %176, %176 : vector<24x128xf32>
      %178 = arith.minimumf %174, %175 : vector<24x128xf32>
      %179 = arith.addf %178, %4 : vector<24x128xf32>
      %180 = arith.subf %6, %177 : vector<24x128xf32>
      %cst_48 = arith.constant 0.000000e+00 : f32
      %181 = vector.broadcast %cst_48 : f32 to vector<24x128xf32>
      %182 = arith.maximumf %180, %181 : vector<24x128xf32>
      %183 = arith.addf %174, %175 : vector<24x128xf32>
      %184 = math.sqrt %182 : vector<24x128xf32>
      %185 = arith.addf %183, %184 : vector<24x128xf32>
      %cst_49 = arith.constant 5.000000e-01 : f32
      %186 = vector.broadcast %cst_49 : f32 to vector<24x128xf32>
      %187 = arith.mulf %186, %185 : vector<24x128xf32>
      %188 = arith.cmpf oge, %177, %5 : vector<24x128xf32>
      %189 = arith.select %188, %179, %187 : vector<24x128xi1>, vector<24x128xf32>
      %190 = arith.minimumf %169, %189 : vector<24x128xf32>
      %cst_50 = arith.constant 1.000000e+09 : f32
      %191 = vector.broadcast %cst_50 : f32 to vector<24x128xf32>
      %192 = arith.select %13, %191, %190 : vector<24x128xi1>, vector<24x128xf32>
      %c1_i32_51 = arith.constant 1 : i32
      %193 = tpu.dynamic_rotate %192 by %c1_i32_51 dim 0 : vector<24x128xf32>, i32 -> vector<24x128xf32>
      %c23_i32_52 = arith.constant 23 : i32
      %194 = tpu.dynamic_rotate %192 by %c23_i32_52 dim 0 : vector<24x128xf32>, i32 -> vector<24x128xf32>
      %c1_i32_53 = arith.constant 1 : i32
      %195 = tpu.dynamic_rotate %192 by %c1_i32_53 dim 1 : vector<24x128xf32>, i32 -> vector<24x128xf32>
      %c127_i32_54 = arith.constant 127 : i32
      %196 = tpu.dynamic_rotate %192 by %c127_i32_54 dim 1 : vector<24x128xf32>, i32 -> vector<24x128xf32>
      %197 = arith.minimumf %193, %194 : vector<24x128xf32>
      %198 = arith.minimumf %195, %196 : vector<24x128xf32>
      %199 = arith.subf %197, %198 : vector<24x128xf32>
      %200 = arith.mulf %199, %199 : vector<24x128xf32>
      %201 = arith.minimumf %197, %198 : vector<24x128xf32>
      %202 = arith.addf %201, %4 : vector<24x128xf32>
      %203 = arith.subf %6, %200 : vector<24x128xf32>
      %cst_55 = arith.constant 0.000000e+00 : f32
      %204 = vector.broadcast %cst_55 : f32 to vector<24x128xf32>
      %205 = arith.maximumf %203, %204 : vector<24x128xf32>
      %206 = arith.addf %197, %198 : vector<24x128xf32>
      %207 = math.sqrt %205 : vector<24x128xf32>
      %208 = arith.addf %206, %207 : vector<24x128xf32>
      %cst_56 = arith.constant 5.000000e-01 : f32
      %209 = vector.broadcast %cst_56 : f32 to vector<24x128xf32>
      %210 = arith.mulf %209, %208 : vector<24x128xf32>
      %211 = arith.cmpf oge, %200, %5 : vector<24x128xf32>
      %212 = arith.select %211, %202, %210 : vector<24x128xi1>, vector<24x128xf32>
      %213 = arith.minimumf %192, %212 : vector<24x128xf32>
      %cst_57 = arith.constant 1.000000e+09 : f32
      %214 = vector.broadcast %cst_57 : f32 to vector<24x128xf32>
      %215 = arith.select %13, %214, %213 : vector<24x128xi1>, vector<24x128xf32>
      %c1_i32_58 = arith.constant 1 : i32
      %216 = tpu.dynamic_rotate %215 by %c1_i32_58 dim 0 : vector<24x128xf32>, i32 -> vector<24x128xf32>
      %c23_i32_59 = arith.constant 23 : i32
      %217 = tpu.dynamic_rotate %215 by %c23_i32_59 dim 0 : vector<24x128xf32>, i32 -> vector<24x128xf32>
      %c1_i32_60 = arith.constant 1 : i32
      %218 = tpu.dynamic_rotate %215 by %c1_i32_60 dim 1 : vector<24x128xf32>, i32 -> vector<24x128xf32>
      %c127_i32_61 = arith.constant 127 : i32
      %219 = tpu.dynamic_rotate %215 by %c127_i32_61 dim 1 : vector<24x128xf32>, i32 -> vector<24x128xf32>
      %220 = arith.minimumf %216, %217 : vector<24x128xf32>
      %221 = arith.minimumf %218, %219 : vector<24x128xf32>
      %222 = arith.subf %220, %221 : vector<24x128xf32>
      %223 = arith.mulf %222, %222 : vector<24x128xf32>
      %224 = arith.minimumf %220, %221 : vector<24x128xf32>
      %225 = arith.addf %224, %4 : vector<24x128xf32>
      %226 = arith.subf %6, %223 : vector<24x128xf32>
      %cst_62 = arith.constant 0.000000e+00 : f32
      %227 = vector.broadcast %cst_62 : f32 to vector<24x128xf32>
      %228 = arith.maximumf %226, %227 : vector<24x128xf32>
      %229 = arith.addf %220, %221 : vector<24x128xf32>
      %230 = math.sqrt %228 : vector<24x128xf32>
      %231 = arith.addf %229, %230 : vector<24x128xf32>
      %cst_63 = arith.constant 5.000000e-01 : f32
      %232 = vector.broadcast %cst_63 : f32 to vector<24x128xf32>
      %233 = arith.mulf %232, %231 : vector<24x128xf32>
      %234 = arith.cmpf oge, %223, %5 : vector<24x128xf32>
      %235 = arith.select %234, %225, %233 : vector<24x128xi1>, vector<24x128xf32>
      %236 = arith.minimumf %215, %235 : vector<24x128xf32>
      %cst_64 = arith.constant 1.000000e+09 : f32
      %237 = vector.broadcast %cst_64 : f32 to vector<24x128xf32>
      %238 = arith.select %13, %237, %236 : vector<24x128xi1>, vector<24x128xf32>
      %c1_i32_65 = arith.constant 1 : i32
      %239 = tpu.dynamic_rotate %238 by %c1_i32_65 dim 0 : vector<24x128xf32>, i32 -> vector<24x128xf32>
      %c23_i32_66 = arith.constant 23 : i32
      %240 = tpu.dynamic_rotate %238 by %c23_i32_66 dim 0 : vector<24x128xf32>, i32 -> vector<24x128xf32>
      %c1_i32_67 = arith.constant 1 : i32
      %241 = tpu.dynamic_rotate %238 by %c1_i32_67 dim 1 : vector<24x128xf32>, i32 -> vector<24x128xf32>
      %c127_i32_68 = arith.constant 127 : i32
      %242 = tpu.dynamic_rotate %238 by %c127_i32_68 dim 1 : vector<24x128xf32>, i32 -> vector<24x128xf32>
      %243 = arith.minimumf %239, %240 : vector<24x128xf32>
      %244 = arith.minimumf %241, %242 : vector<24x128xf32>
      %245 = arith.subf %243, %244 : vector<24x128xf32>
      %246 = arith.mulf %245, %245 : vector<24x128xf32>
      %247 = arith.minimumf %243, %244 : vector<24x128xf32>
      %248 = arith.addf %247, %4 : vector<24x128xf32>
      %249 = arith.subf %6, %246 : vector<24x128xf32>
      %cst_69 = arith.constant 0.000000e+00 : f32
      %250 = vector.broadcast %cst_69 : f32 to vector<24x128xf32>
      %251 = arith.maximumf %249, %250 : vector<24x128xf32>
      %252 = arith.addf %243, %244 : vector<24x128xf32>
      %253 = math.sqrt %251 : vector<24x128xf32>
      %254 = arith.addf %252, %253 : vector<24x128xf32>
      %cst_70 = arith.constant 5.000000e-01 : f32
      %255 = vector.broadcast %cst_70 : f32 to vector<24x128xf32>
      %256 = arith.mulf %255, %254 : vector<24x128xf32>
      %257 = arith.cmpf oge, %246, %5 : vector<24x128xf32>
      %258 = arith.select %257, %248, %256 : vector<24x128xi1>, vector<24x128xf32>
      %259 = arith.minimumf %238, %258 : vector<24x128xf32>
      %cst_71 = arith.constant 1.000000e+09 : f32
      %260 = vector.broadcast %cst_71 : f32 to vector<24x128xf32>
      %261 = arith.select %13, %260, %259 : vector<24x128xi1>, vector<24x128xf32>
      %c1_i32_72 = arith.constant 1 : i32
      %262 = tpu.dynamic_rotate %261 by %c1_i32_72 dim 0 : vector<24x128xf32>, i32 -> vector<24x128xf32>
      %c23_i32_73 = arith.constant 23 : i32
      %263 = tpu.dynamic_rotate %261 by %c23_i32_73 dim 0 : vector<24x128xf32>, i32 -> vector<24x128xf32>
      %c1_i32_74 = arith.constant 1 : i32
      %264 = tpu.dynamic_rotate %261 by %c1_i32_74 dim 1 : vector<24x128xf32>, i32 -> vector<24x128xf32>
      %c127_i32_75 = arith.constant 127 : i32
      %265 = tpu.dynamic_rotate %261 by %c127_i32_75 dim 1 : vector<24x128xf32>, i32 -> vector<24x128xf32>
      %266 = arith.minimumf %262, %263 : vector<24x128xf32>
      %267 = arith.minimumf %264, %265 : vector<24x128xf32>
      %268 = arith.subf %266, %267 : vector<24x128xf32>
      %269 = arith.mulf %268, %268 : vector<24x128xf32>
      %270 = arith.minimumf %266, %267 : vector<24x128xf32>
      %271 = arith.addf %270, %4 : vector<24x128xf32>
      %272 = arith.subf %6, %269 : vector<24x128xf32>
      %cst_76 = arith.constant 0.000000e+00 : f32
      %273 = vector.broadcast %cst_76 : f32 to vector<24x128xf32>
      %274 = arith.maximumf %272, %273 : vector<24x128xf32>
      %275 = arith.addf %266, %267 : vector<24x128xf32>
      %276 = math.sqrt %274 : vector<24x128xf32>
      %277 = arith.addf %275, %276 : vector<24x128xf32>
      %cst_77 = arith.constant 5.000000e-01 : f32
      %278 = vector.broadcast %cst_77 : f32 to vector<24x128xf32>
      %279 = arith.mulf %278, %277 : vector<24x128xf32>
      %280 = arith.cmpf oge, %269, %5 : vector<24x128xf32>
      %281 = arith.select %280, %271, %279 : vector<24x128xi1>, vector<24x128xf32>
      %282 = arith.minimumf %261, %281 : vector<24x128xf32>
      %cst_78 = arith.constant 1.000000e+09 : f32
      %283 = vector.broadcast %cst_78 : f32 to vector<24x128xf32>
      %284 = arith.select %13, %283, %282 : vector<24x128xi1>, vector<24x128xf32>
      %c1_i32_79 = arith.constant 1 : i32
      %285 = tpu.dynamic_rotate %284 by %c1_i32_79 dim 0 : vector<24x128xf32>, i32 -> vector<24x128xf32>
      %c23_i32_80 = arith.constant 23 : i32
      %286 = tpu.dynamic_rotate %284 by %c23_i32_80 dim 0 : vector<24x128xf32>, i32 -> vector<24x128xf32>
      %c1_i32_81 = arith.constant 1 : i32
      %287 = tpu.dynamic_rotate %284 by %c1_i32_81 dim 1 : vector<24x128xf32>, i32 -> vector<24x128xf32>
      %c127_i32_82 = arith.constant 127 : i32
      %288 = tpu.dynamic_rotate %284 by %c127_i32_82 dim 1 : vector<24x128xf32>, i32 -> vector<24x128xf32>
      %289 = arith.minimumf %285, %286 : vector<24x128xf32>
      %290 = arith.minimumf %287, %288 : vector<24x128xf32>
      %291 = arith.subf %289, %290 : vector<24x128xf32>
      %292 = arith.mulf %291, %291 : vector<24x128xf32>
      %293 = arith.minimumf %289, %290 : vector<24x128xf32>
      %294 = arith.addf %293, %4 : vector<24x128xf32>
      %295 = arith.subf %6, %292 : vector<24x128xf32>
      %cst_83 = arith.constant 0.000000e+00 : f32
      %296 = vector.broadcast %cst_83 : f32 to vector<24x128xf32>
      %297 = arith.maximumf %295, %296 : vector<24x128xf32>
      %298 = arith.addf %289, %290 : vector<24x128xf32>
      %299 = math.sqrt %297 : vector<24x128xf32>
      %300 = arith.addf %298, %299 : vector<24x128xf32>
      %cst_84 = arith.constant 5.000000e-01 : f32
      %301 = vector.broadcast %cst_84 : f32 to vector<24x128xf32>
      %302 = arith.mulf %301, %300 : vector<24x128xf32>
      %303 = arith.cmpf oge, %292, %5 : vector<24x128xf32>
      %304 = arith.select %303, %294, %302 : vector<24x128xi1>, vector<24x128xf32>
      %305 = arith.minimumf %284, %304 : vector<24x128xf32>
      %cst_85 = arith.constant 1.000000e+09 : f32
      %306 = vector.broadcast %cst_85 : f32 to vector<24x128xf32>
      %307 = arith.select %13, %306, %305 : vector<24x128xi1>, vector<24x128xf32>
      %c1_i32_86 = arith.constant 1 : i32
      %308 = tpu.dynamic_rotate %307 by %c1_i32_86 dim 0 : vector<24x128xf32>, i32 -> vector<24x128xf32>
      %c23_i32_87 = arith.constant 23 : i32
      %309 = tpu.dynamic_rotate %307 by %c23_i32_87 dim 0 : vector<24x128xf32>, i32 -> vector<24x128xf32>
      %c1_i32_88 = arith.constant 1 : i32
      %310 = tpu.dynamic_rotate %307 by %c1_i32_88 dim 1 : vector<24x128xf32>, i32 -> vector<24x128xf32>
      %c127_i32_89 = arith.constant 127 : i32
      %311 = tpu.dynamic_rotate %307 by %c127_i32_89 dim 1 : vector<24x128xf32>, i32 -> vector<24x128xf32>
      %312 = arith.minimumf %308, %309 : vector<24x128xf32>
      %313 = arith.minimumf %310, %311 : vector<24x128xf32>
      %314 = arith.subf %312, %313 : vector<24x128xf32>
      %315 = arith.mulf %314, %314 : vector<24x128xf32>
      %316 = arith.minimumf %312, %313 : vector<24x128xf32>
      %317 = arith.addf %316, %4 : vector<24x128xf32>
      %318 = arith.subf %6, %315 : vector<24x128xf32>
      %cst_90 = arith.constant 0.000000e+00 : f32
      %319 = vector.broadcast %cst_90 : f32 to vector<24x128xf32>
      %320 = arith.maximumf %318, %319 : vector<24x128xf32>
      %321 = arith.addf %312, %313 : vector<24x128xf32>
      %322 = math.sqrt %320 : vector<24x128xf32>
      %323 = arith.addf %321, %322 : vector<24x128xf32>
      %cst_91 = arith.constant 5.000000e-01 : f32
      %324 = vector.broadcast %cst_91 : f32 to vector<24x128xf32>
      %325 = arith.mulf %324, %323 : vector<24x128xf32>
      %326 = arith.cmpf oge, %315, %5 : vector<24x128xf32>
      %327 = arith.select %326, %317, %325 : vector<24x128xi1>, vector<24x128xf32>
      %328 = arith.minimumf %307, %327 : vector<24x128xf32>
      %cst_92 = arith.constant 1.000000e+09 : f32
      %329 = vector.broadcast %cst_92 : f32 to vector<24x128xf32>
      %330 = arith.select %13, %329, %328 : vector<24x128xi1>, vector<24x128xf32>
      %c1_i32_93 = arith.constant 1 : i32
      %331 = tpu.dynamic_rotate %330 by %c1_i32_93 dim 0 : vector<24x128xf32>, i32 -> vector<24x128xf32>
      %c23_i32_94 = arith.constant 23 : i32
      %332 = tpu.dynamic_rotate %330 by %c23_i32_94 dim 0 : vector<24x128xf32>, i32 -> vector<24x128xf32>
      %c1_i32_95 = arith.constant 1 : i32
      %333 = tpu.dynamic_rotate %330 by %c1_i32_95 dim 1 : vector<24x128xf32>, i32 -> vector<24x128xf32>
      %c127_i32_96 = arith.constant 127 : i32
      %334 = tpu.dynamic_rotate %330 by %c127_i32_96 dim 1 : vector<24x128xf32>, i32 -> vector<24x128xf32>
      %335 = arith.minimumf %331, %332 : vector<24x128xf32>
      %336 = arith.minimumf %333, %334 : vector<24x128xf32>
      %337 = arith.subf %335, %336 : vector<24x128xf32>
      %338 = arith.mulf %337, %337 : vector<24x128xf32>
      %339 = arith.minimumf %335, %336 : vector<24x128xf32>
      %340 = arith.addf %339, %4 : vector<24x128xf32>
      %341 = arith.subf %6, %338 : vector<24x128xf32>
      %cst_97 = arith.constant 0.000000e+00 : f32
      %342 = vector.broadcast %cst_97 : f32 to vector<24x128xf32>
      %343 = arith.maximumf %341, %342 : vector<24x128xf32>
      %344 = arith.addf %335, %336 : vector<24x128xf32>
      %345 = math.sqrt %343 : vector<24x128xf32>
      %346 = arith.addf %344, %345 : vector<24x128xf32>
      %cst_98 = arith.constant 5.000000e-01 : f32
      %347 = vector.broadcast %cst_98 : f32 to vector<24x128xf32>
      %348 = arith.mulf %347, %346 : vector<24x128xf32>
      %349 = arith.cmpf oge, %338, %5 : vector<24x128xf32>
      %350 = arith.select %349, %340, %348 : vector<24x128xi1>, vector<24x128xf32>
      %351 = arith.minimumf %330, %350 : vector<24x128xf32>
      %cst_99 = arith.constant 1.000000e+09 : f32
      %352 = vector.broadcast %cst_99 : f32 to vector<24x128xf32>
      %353 = arith.select %13, %352, %351 : vector<24x128xi1>, vector<24x128xf32>
      %c1_i32_100 = arith.constant 1 : i32
      %354 = tpu.dynamic_rotate %353 by %c1_i32_100 dim 0 : vector<24x128xf32>, i32 -> vector<24x128xf32>
      %c23_i32_101 = arith.constant 23 : i32
      %355 = tpu.dynamic_rotate %353 by %c23_i32_101 dim 0 : vector<24x128xf32>, i32 -> vector<24x128xf32>
      %c1_i32_102 = arith.constant 1 : i32
      %356 = tpu.dynamic_rotate %353 by %c1_i32_102 dim 1 : vector<24x128xf32>, i32 -> vector<24x128xf32>
      %c127_i32_103 = arith.constant 127 : i32
      %357 = tpu.dynamic_rotate %353 by %c127_i32_103 dim 1 : vector<24x128xf32>, i32 -> vector<24x128xf32>
      %358 = arith.minimumf %354, %355 : vector<24x128xf32>
      %359 = arith.minimumf %356, %357 : vector<24x128xf32>
      %360 = arith.subf %358, %359 : vector<24x128xf32>
      %361 = arith.mulf %360, %360 : vector<24x128xf32>
      %362 = arith.minimumf %358, %359 : vector<24x128xf32>
      %363 = arith.addf %362, %4 : vector<24x128xf32>
      %364 = arith.subf %6, %361 : vector<24x128xf32>
      %cst_104 = arith.constant 0.000000e+00 : f32
      %365 = vector.broadcast %cst_104 : f32 to vector<24x128xf32>
      %366 = arith.maximumf %364, %365 : vector<24x128xf32>
      %367 = arith.addf %358, %359 : vector<24x128xf32>
      %368 = math.sqrt %366 : vector<24x128xf32>
      %369 = arith.addf %367, %368 : vector<24x128xf32>
      %cst_105 = arith.constant 5.000000e-01 : f32
      %370 = vector.broadcast %cst_105 : f32 to vector<24x128xf32>
      %371 = arith.mulf %370, %369 : vector<24x128xf32>
      %372 = arith.cmpf oge, %361, %5 : vector<24x128xf32>
      %373 = arith.select %372, %363, %371 : vector<24x128xi1>, vector<24x128xf32>
      %374 = arith.minimumf %353, %373 : vector<24x128xf32>
      %cst_106 = arith.constant 1.000000e+09 : f32
      %375 = vector.broadcast %cst_106 : f32 to vector<24x128xf32>
      %376 = arith.select %13, %375, %374 : vector<24x128xi1>, vector<24x128xf32>
      %c1_i32_107 = arith.constant 1 : i32
      %377 = tpu.dynamic_rotate %376 by %c1_i32_107 dim 0 : vector<24x128xf32>, i32 -> vector<24x128xf32>
      %c23_i32_108 = arith.constant 23 : i32
      %378 = tpu.dynamic_rotate %376 by %c23_i32_108 dim 0 : vector<24x128xf32>, i32 -> vector<24x128xf32>
      %c1_i32_109 = arith.constant 1 : i32
      %379 = tpu.dynamic_rotate %376 by %c1_i32_109 dim 1 : vector<24x128xf32>, i32 -> vector<24x128xf32>
      %c127_i32_110 = arith.constant 127 : i32
      %380 = tpu.dynamic_rotate %376 by %c127_i32_110 dim 1 : vector<24x128xf32>, i32 -> vector<24x128xf32>
      %381 = arith.minimumf %377, %378 : vector<24x128xf32>
      %382 = arith.minimumf %379, %380 : vector<24x128xf32>
      %383 = arith.subf %381, %382 : vector<24x128xf32>
      %384 = arith.mulf %383, %383 : vector<24x128xf32>
      %385 = arith.minimumf %381, %382 : vector<24x128xf32>
      %386 = arith.addf %385, %4 : vector<24x128xf32>
      %387 = arith.subf %6, %384 : vector<24x128xf32>
      %cst_111 = arith.constant 0.000000e+00 : f32
      %388 = vector.broadcast %cst_111 : f32 to vector<24x128xf32>
      %389 = arith.maximumf %387, %388 : vector<24x128xf32>
      %390 = arith.addf %381, %382 : vector<24x128xf32>
      %391 = math.sqrt %389 : vector<24x128xf32>
      %392 = arith.addf %390, %391 : vector<24x128xf32>
      %cst_112 = arith.constant 5.000000e-01 : f32
      %393 = vector.broadcast %cst_112 : f32 to vector<24x128xf32>
      %394 = arith.mulf %393, %392 : vector<24x128xf32>
      %395 = arith.cmpf oge, %384, %5 : vector<24x128xf32>
      %396 = arith.select %395, %386, %394 : vector<24x128xi1>, vector<24x128xf32>
      %397 = arith.minimumf %376, %396 : vector<24x128xf32>
      %cst_113 = arith.constant 1.000000e+09 : f32
      %398 = vector.broadcast %cst_113 : f32 to vector<24x128xf32>
      %399 = arith.select %13, %398, %397 : vector<24x128xi1>, vector<24x128xf32>
      %c1_i32_114 = arith.constant 1 : i32
      %400 = tpu.dynamic_rotate %399 by %c1_i32_114 dim 0 : vector<24x128xf32>, i32 -> vector<24x128xf32>
      %c23_i32_115 = arith.constant 23 : i32
      %401 = tpu.dynamic_rotate %399 by %c23_i32_115 dim 0 : vector<24x128xf32>, i32 -> vector<24x128xf32>
      %c1_i32_116 = arith.constant 1 : i32
      %402 = tpu.dynamic_rotate %399 by %c1_i32_116 dim 1 : vector<24x128xf32>, i32 -> vector<24x128xf32>
      %c127_i32_117 = arith.constant 127 : i32
      %403 = tpu.dynamic_rotate %399 by %c127_i32_117 dim 1 : vector<24x128xf32>, i32 -> vector<24x128xf32>
      %404 = arith.minimumf %400, %401 : vector<24x128xf32>
      %405 = arith.minimumf %402, %403 : vector<24x128xf32>
      %406 = arith.subf %404, %405 : vector<24x128xf32>
      %407 = arith.mulf %406, %406 : vector<24x128xf32>
      %408 = arith.minimumf %404, %405 : vector<24x128xf32>
      %409 = arith.addf %408, %4 : vector<24x128xf32>
      %410 = arith.subf %6, %407 : vector<24x128xf32>
      %cst_118 = arith.constant 0.000000e+00 : f32
      %411 = vector.broadcast %cst_118 : f32 to vector<24x128xf32>
      %412 = arith.maximumf %410, %411 : vector<24x128xf32>
      %413 = arith.addf %404, %405 : vector<24x128xf32>
      %414 = math.sqrt %412 : vector<24x128xf32>
      %415 = arith.addf %413, %414 : vector<24x128xf32>
      %cst_119 = arith.constant 5.000000e-01 : f32
      %416 = vector.broadcast %cst_119 : f32 to vector<24x128xf32>
      %417 = arith.mulf %416, %415 : vector<24x128xf32>
      %418 = arith.cmpf oge, %407, %5 : vector<24x128xf32>
      %419 = arith.select %418, %409, %417 : vector<24x128xi1>, vector<24x128xf32>
      %420 = arith.minimumf %399, %419 : vector<24x128xf32>
      %cst_120 = arith.constant 1.000000e+09 : f32
      %421 = vector.broadcast %cst_120 : f32 to vector<24x128xf32>
      %422 = arith.select %13, %421, %420 : vector<24x128xi1>, vector<24x128xf32>
      %c1_i32_121 = arith.constant 1 : i32
      %423 = tpu.dynamic_rotate %422 by %c1_i32_121 dim 0 : vector<24x128xf32>, i32 -> vector<24x128xf32>
      %c23_i32_122 = arith.constant 23 : i32
      %424 = tpu.dynamic_rotate %422 by %c23_i32_122 dim 0 : vector<24x128xf32>, i32 -> vector<24x128xf32>
      %c1_i32_123 = arith.constant 1 : i32
      %425 = tpu.dynamic_rotate %422 by %c1_i32_123 dim 1 : vector<24x128xf32>, i32 -> vector<24x128xf32>
      %c127_i32_124 = arith.constant 127 : i32
      %426 = tpu.dynamic_rotate %422 by %c127_i32_124 dim 1 : vector<24x128xf32>, i32 -> vector<24x128xf32>
      %427 = arith.minimumf %423, %424 : vector<24x128xf32>
      %428 = arith.minimumf %425, %426 : vector<24x128xf32>
      %429 = arith.subf %427, %428 : vector<24x128xf32>
      %430 = arith.mulf %429, %429 : vector<24x128xf32>
      %431 = arith.minimumf %427, %428 : vector<24x128xf32>
      %432 = arith.addf %431, %4 : vector<24x128xf32>
      %433 = arith.subf %6, %430 : vector<24x128xf32>
      %cst_125 = arith.constant 0.000000e+00 : f32
      %434 = vector.broadcast %cst_125 : f32 to vector<24x128xf32>
      %435 = arith.maximumf %433, %434 : vector<24x128xf32>
      %436 = arith.addf %427, %428 : vector<24x128xf32>
      %437 = math.sqrt %435 : vector<24x128xf32>
      %438 = arith.addf %436, %437 : vector<24x128xf32>
      %cst_126 = arith.constant 5.000000e-01 : f32
      %439 = vector.broadcast %cst_126 : f32 to vector<24x128xf32>
      %440 = arith.mulf %439, %438 : vector<24x128xf32>
      %441 = arith.cmpf oge, %430, %5 : vector<24x128xf32>
      %442 = arith.select %441, %432, %440 : vector<24x128xi1>, vector<24x128xf32>
      %443 = arith.minimumf %422, %442 : vector<24x128xf32>
      %cst_127 = arith.constant 1.000000e+09 : f32
      %444 = vector.broadcast %cst_127 : f32 to vector<24x128xf32>
      %445 = arith.select %13, %444, %443 : vector<24x128xi1>, vector<24x128xf32>
      %446 = arith.subf %445, %422 : vector<24x128xf32>
      %447 = math.absf %446 : vector<24x128xf32>
      %448 = vector.shape_cast %447 : vector<24x128xf32> to vector<1x24x128xf32>
      %cst_128 = arith.constant dense<0xFF800000> : vector<1xf32>
      %449 = vector.multi_reduction <maximumf>, %448, %cst_128 [1, 2] : vector<1x24x128xf32> to vector<1xf32>
      %450 = vector.shape_cast %449 : vector<1xf32> to vector<1x1x1xf32>
      %451 = vector.extract %450[0, 0, 0] : f32 from vector<1x1x1xf32>
      %c16_i32_129 = arith.constant 16 : i32
      %452 = arith.addi %arg6, %c16_i32_129 : i32
      scf.yield %452, %445, %451 : i32, vector<24x128xf32>, f32
    }
    %c0_6 = arith.constant 0 : index
    %c0_7 = arith.constant 0 : index
    %23 = vector.load %arg4[%c0_6, %c0_7] : memref<24x128xf32, #tpu.memory_space<vmem>>, vector<24x128xf32>
    tpu.vector_store %arg4[%c0_6, %c0_7], %22#1 {strides = array<i32>} : memref<24x128xf32, #tpu.memory_space<vmem>>, vector<24x128xf32>,
    %c0_8 = arith.constant 0 : index
    %c0_9 = arith.constant 0 : index
    %24 = vector.load %arg2[%c0_8, %c0_9] : memref<1x128xf32, #tpu.memory_space<vmem>>, vector<1x128xf32>
    %c0_10 = arith.constant 0 : index
    %c0_11 = arith.constant 0 : index
    %25 = vector.load %arg3[%c0_10, %c0_11] : memref<1x128xf32, #tpu.memory_space<vmem>>, vector<1x128xf32>
    %26 = math.ceil %24 : vector<1x128xf32>
    %27 = math.floor %24 : vector<1x128xf32>
    %28 = math.ceil %25 : vector<1x128xf32>
    %29 = math.floor %25 : vector<1x128xf32>
    %30 = tpu.concatenate %28, %29 in 1 : vector<1x128xf32>, vector<1x128xf32> -> vector<1x256xf32>
    %31 = arith.fptosi %30 : vector<1x256xf32> to vector<1x256xi32>
    %32 = tpu.iota {dimensions = array<i32: 0>} : vector<128x256xi32>
    %33 = vector.broadcast %31 : vector<1x256xi32> to vector<128x256xi32>
    %34 = arith.cmpi eq, %32, %33 : vector<128x256xi32>
    %35 = arith.extui %34 : vector<128x256xi1> to vector<128x256xi32>
    %36 = arith.sitofp %35 : vector<128x256xi32> to vector<128x256xf32>
    %cst_12 = arith.constant dense<0.000000e+00> : vector<24x256xf32>
    %37 = tpu.matmul %22#1, %36, %cst_12 {dimension_numbers = #tpu.dot_dimension_numbers<[1], [0], [0], [1], [0, 0, 1, 1], [], []>} : vector<24x128xf32>, vector<128x256xf32>, vector<24x256xf32> -> vector<24x256xf32>
    %38 = vector.extract_strided_slice %37 {offsets = [0, 0], sizes = [24, 128], strides = [1, 1]} : vector<24x256xf32> to vector<24x128xf32>
    %39 = vector.extract_strided_slice %37 {offsets = [0, 128], sizes = [24, 128], strides = [1, 1]} : vector<24x256xf32> to vector<24x128xf32>
    %40 = tpu.iota {dimensions = array<i32: 0>} : vector<24x128xi32>
    %41 = arith.fptosi %26 : vector<1x128xf32> to vector<1x128xi32>
    %42 = vector.broadcast %41 : vector<1x128xi32> to vector<24x128xi32>
    %43 = arith.cmpi eq, %40, %42 : vector<24x128xi32>
    %44 = arith.extui %43 : vector<24x128xi1> to vector<24x128xi32>
    %45 = arith.sitofp %44 : vector<24x128xi32> to vector<24x128xf32>
    %46 = arith.fptosi %27 : vector<1x128xf32> to vector<1x128xi32>
    %47 = vector.broadcast %46 : vector<1x128xi32> to vector<24x128xi32>
    %48 = arith.cmpi eq, %40, %47 : vector<24x128xi32>
    %49 = arith.extui %48 : vector<24x128xi1> to vector<24x128xi32>
    %50 = arith.sitofp %49 : vector<24x128xi32> to vector<24x128xf32>
    %51 = arith.mulf %38, %45 : vector<24x128xf32>
    %cst_13 = arith.constant dense<0.000000e+00> : vector<128xf32>
    %52 = vector.multi_reduction <add>, %51, %cst_13 [0] : vector<24x128xf32> to vector<128xf32>
    %53 = vector.shape_cast %52 : vector<128xf32> to vector<1x128xf32>
    %54 = arith.mulf %39, %45 : vector<24x128xf32>
    %cst_14 = arith.constant dense<0.000000e+00> : vector<128xf32>
    %55 = vector.multi_reduction <add>, %54, %cst_14 [0] : vector<24x128xf32> to vector<128xf32>
    %56 = vector.shape_cast %55 : vector<128xf32> to vector<1x128xf32>
    %57 = arith.mulf %39, %50 : vector<24x128xf32>
    %cst_15 = arith.constant dense<0.000000e+00> : vector<128xf32>
    %58 = vector.multi_reduction <add>, %57, %cst_15 [0] : vector<24x128xf32> to vector<128xf32>
    %59 = vector.shape_cast %58 : vector<128xf32> to vector<1x128xf32>
    %60 = arith.subf %26, %24 : vector<1x128xf32>
    %61 = arith.subf %24, %27 : vector<1x128xf32>
    %62 = arith.subf %28, %25 : vector<1x128xf32>
    %63 = arith.subf %25, %29 : vector<1x128xf32>
    %64 = arith.mulf %60, %62 : vector<1x128xf32>
    %65 = arith.mulf %64, %59 : vector<1x128xf32>
    %66 = arith.mulf %60, %63 : vector<1x128xf32>
    %67 = arith.mulf %66, %56 : vector<1x128xf32>
    %68 = arith.addf %65, %67 : vector<1x128xf32>
    %69 = arith.mulf %61, %62 : vector<1x128xf32>
    %70 = arith.mulf %69, %56 : vector<1x128xf32>
    %71 = arith.addf %68, %70 : vector<1x128xf32>
    %72 = arith.mulf %61, %63 : vector<1x128xf32>
    %73 = arith.mulf %72, %53 : vector<1x128xf32>
    %74 = arith.addf %71, %73 : vector<1x128xf32>
    %cst_16 = arith.constant 1.000000e+00 : f32
    %75 = vector.broadcast %cst_16 : f32 to vector<1x128xf32>
    %76 = arith.mulf %74, %75 : vector<1x128xf32>
    %c0_17 = arith.constant 0 : index
    %c0_18 = arith.constant 0 : index
    %77 = vector.load %arg5[%c0_17, %c0_18] : memref<1x128xf32, #tpu.memory_space<vmem>>, vector<1x128xf32>
    tpu.vector_store %arg5[%c0_17, %c0_18], %76 {strides = array<i32>} : memref<1x128xf32, #tpu.memory_space<vmem>>, vector<1x128xf32>,
    return
  }
}

</mosaic_0001>

<bundles_post_ra>
// kernel: tpu_custom_call.1
= control target key start
LH: loop header
LB: loop body
LE: loop exit
PB: predicated region body
PF: predicated region fallthrough
CT: control target
= control target key end

     0   :  { %11 = vsyncpa [#allocation5], 0  ;;  %s3161_s0 = inlined_call_operand.hbm [shape: s32[2], index: 0, kind: input, shape index: {}]   ;;  %s3162_s1 = inlined_call_operand.hbm [shape: f32[24,128], index: 1, kind: input, shape index: {}]   ;;  %s3163_s2 = inlined_call_operand.vmem [shape: f32[1,128], index: 2, kind: input, shape index: {}]   ;;  %s3164_s3 = inlined_call_operand.vmem [shape: f32[1,128], index: 3, kind: input, shape index: {}]   ;;  %s3165_s4 = inlined_call_operand.hbm [shape: f32[24,128], index: 4, kind: output, shape index: {0}]   ;;  %s3166_s5 = inlined_call_operand.hbm [shape: f32[1,128], index: 5, kind: output, shape index: {1}]  }
   0x1   :  { %12 = vsyncpa [#allocation3], 0 }
   0x2   :  { %13 = vsyncpa [#allocation4], 0 }
   0x3   :  { %14 = vsyncpa [#allocation9], 0  ;;  %s2128_s20 = scalar_lea.hbm %s3161_s0, 16 }
   0x4   :  { %p2129_p0 = scmp.ne.s32.totalorder %s3161_s0, %s2128_s20  ;;  %p2132_p1 = scmp.lt.u32.totalorder %s2128_s20, %s3161_s0 }
   0x6   :  { %p2134_p2 = pnand %p2132_p1, %p2129_p0 }
   0x8   :  { %2137 = shalt.err (!%p2134_p2)
}
   0x9   :  { %s2244_s25 = smov [#allocation2]   ;;  %s2245_s28 = smov [#allocation6]  }
   0xa   :  { %22 = dma.hbm_to_smem %s3161_s0, 16, %s2244_s25, [#allocation5]  }
   0xb   :  { %s28_s29 = sshll.u32 %s2245_s28, 4  ;;  %s2138_s7 = scalar_lea.hbm %s3162_s1, 384  ;;  %s29_s29 = int_to_ptr.vmem [resolvable:$true] %s28_s29 }
   0xc   :  { %p2139_p3 = scmp.ne.s32.totalorder %s3162_s1, %s2138_s7  ;;  %p2142_p4 = scmp.lt.u32.totalorder %s2138_s7, %s3162_s1 }
   0xe   :  { %p2144_p5 = pnand %p2142_p4, %p2139_p3 }
  0x10   :  { %2147 = shalt.err (!%p2144_p5)
}
  0x11   :  { %s2148_s12 = scalar_lea.vmem %s29_s29, 384  ;;  %p2153_p7 = scmp.lt.s32.totalorder %s29_s29, %s29_s29 }
  0x12   :  { %p2149_p6 = scmp.ne.s32.totalorder %s29_s29, %s2148_s12  ;;  %p2154_p8 = scmp.lt.s32.totalorder %s2148_s12, %s2148_s12 }
  0x14   :  { %p2155_p9 = por %p2154_p8, %p2153_p7 }
  0x16   :  { %p2156_p10 = pnand %p2155_p9, %p2149_p6 }
  0x18   :  { %2159 = shalt.err (!%p2156_p10)
}
  0x19   :  { %s2246_s0 = smov 128   ;;  %s2247_s13 = smov 8  }
  0x1a   :  { %34 = dma.hbm_to_vmem [thread:$0]  %s3162_s1, 384, %s29_s29, [#allocation3], %s2246_s0, %s2246_s0, %s2247_s13  }
  0x1b   :  { %2220 = dma.done.wait [#allocation5], 16  }
  0x1c   :  { %2221 = vsyncadd [#allocation5], 4294967280 }
  0x1d   :  { %2222 = dma.done.wait [#allocation3], 384  }
  0x1e   :  { %2223 = vsyncadd [#allocation3], 4294966912 }
  0x1f   :  { %45 = sfence }
  0x20   :  { %s46_s16 = sld [smem:[#allocation2]]  ;;  %s1891_s17 = sld [smem:[#allocation2 + $0x1]]  ;;  %v2313_v0 = vld [vmem:[#allocation6] sm:$0xff]  ;;  %v2315_v1 = vld [vmem:[#allocation6 + $0x8] sm:$0xff]  ;;  %v57_v2 = vlaneseq  ;;  %v2248_v13 = vmov 1e+09  }
  0x21   :  { %v2319_v3 = vmul.f32 %v2313_v0, %v2313_v0  ;;  %v2323_v4 = vmul.f32 %v2315_v1, %v2315_v1  ;;  %s2357_s1 = smov 0  }
  0x22   :  { %v2325_v5 = vshrl.u32 %v57_v2, 7  ;;  %v2327_v6 = vand.u32 127, %v57_v2 }
  0x23   :  { %v2331_v7 = vadd.f32 %v2319_v3, %v2319_v3  ;;  %v2335_v8 = vadd.f32 %v2323_v4, %v2323_v4 }
  0x24   :  { %v2338_v9 = vadd.s32 8, %v2325_v5  ;;  %v2341_v10 = vadd.s32 16, %v2325_v5  ;;  %vm66_vm0 = vcmp.ge.s32.totalorder %v2327_v6, 16 }
  0x26   :  { %v70_v11 = vstv %s46_s16  ;;  %v74_v12 = vstv %s1891_s17 }
  0x27   :  { %vm71_vm1 = vcmp.eq.s32.totalorder %v2325_v5, %v70_v11  ;;  %vm72_vm2 = vcmp.eq.s32.totalorder %v2338_v9, %v70_v11  ;;  %vm73_vm3 = vcmp.eq.s32.totalorder %v2341_v10, %v70_v11  ;;  %vm75_vm4 = vcmp.eq.s32.totalorder %v2327_v6, %v74_v12 }
  0x28   :  { %vm76_vm5 = vmand %vm71_vm1, %vm75_vm4 }
  0x29   :  { %vm77_vm6 = vmand %vm72_vm2, %vm75_vm4  ;;  %v79_v14 = vsel %vm76_vm5, 0.0, %v2248_v13  }
  0x2a   :  { %vm78_vm7 = vmand %vm73_vm3, %vm75_vm4  ;;  %v80_v15 = vsel %vm77_vm6, 0.0, %v2248_v13  }
  0x2b   :  { %v81_v16 = vsel %vm78_vm7, 0.0, %v2248_v13  }
  0x2c LB: > { %s2249_s18 = smov 127   ;;  %s2250_s19 = smov 1   ;;  %v94_v17 = vrot.slane %v2238_v14, 7  ;;  %v101_v18 = vrot.slane %v2238_v14, 1  ;;  %v102_v19 = vrot.slane %v2234_v15, 1  ;;  %v96_v20 = vrot.slane %v2230_v16, 7  ;;  %s2242_s1 = sphi %s2357_s1, %s1553_s1   ;;  %v2238_v14 = vphi %v79_v14, %v3170_v14   ;;  %v2234_v15 = vphi %v80_v15, %v3169_v15   ;;  %v2230_v16 = vphi %v81_v16, %v2986_v16  }
  0x2d   : > { %114 = vrot.lane.b32.xlu1 %v2238_v14, %s2249_s18  ;;  %108 = vrot.lane.b32.xlu0 %v2238_v14, %s2250_s19  ;;  %vm97_vm8 = vcmp.lt.s32.totalorder %v2325_v5, 1  ;;  %vm104_vm9 = vcmp.lt.s32.totalorder %v2325_v5, 7  ;;  %v95_v21 = vrot.slane %v2234_v15, 7  ;;  %v103_v24 = vrot.slane %v2230_v16, 1  ;;  %s1553_s1 = sadd.s32 16, %s2242_s1  }
  0x2e   : > { %v100_v22 = vsel %vm97_vm8, %v96_v20, %v94_v17  ;;  %v106_v23 = vsel %vm104_vm9, %v101_v18, %v102_v19  ;;  %v2251_v20 = vmov 1e+09   ;;  %p88_p11 = scmp.lt.s32.totalorder %s1553_s1, 256 }
  0x2f   : > { %v120_v25 = vmin.f32 %v100_v22, %v106_v23  ;;  %v99_v28 = vsel %vm97_vm8, %v94_v17, %v95_v21  ;;  %v105_v29 = vsel %vm104_vm9, %v102_v19, %v103_v24  ;;  %v2418_v21 = vrot.slane %v2251_v20, 7 }
  0x30   : > { %v121_v32 = vmin.f32 %v99_v28, %v105_v29  ;;  %v2423_v24 = vrot.slane %v2251_v20, 1 }
  0x31   : > { %116 = vrot.lane.b32.xlu1 %v2234_v15, %s2249_s18  ;;  %110 = vrot.lane.b32.xlu0 %v2234_v15, %s2250_s19 }
  0x9f   : > { %v115_v26 = vpop.permute.xlu1 %114  ;;  %v109_v27 = vpop.permute.xlu0 %108 }
  0xa0   : > { %v123_v30 = vmin.f32 %v109_v27, %v115_v26 }
  0xa2   : > { %v126_v31 = vsub.f32 %v120_v25, %v123_v30  ;;  %v132_v45 = vmin.f32 %v120_v25, %v123_v30  ;;  %v144_v47 = vadd.f32 %v123_v30, %v120_v25 }
  0xa3   : > { %v117_v33 = vpop.permute.xlu1 %116  ;;  %v111_v34 = vpop.permute.xlu0 %110 }
  0xa4   : > { %v129_v35 = vmul.f32 %v126_v31, %v126_v31  ;;  %v124_v36 = vmin.f32 %v111_v34, %v117_v33  ;;  %v135_v52 = vadd.f32 %v132_v45, %v2313_v0 }
  0xa6   : > { %v138_v37 = vsub.f32 %v2331_v7, %v129_v35  ;;  %v127_v38 = vsub.f32 %v121_v32, %v124_v36  ;;  %vm174_vm12 = vcmp.ge.f32.partialorder %v129_v35, %v2319_v3  ;;  %v133_v56 = vmin.f32 %v121_v32, %v124_v36 }
  0xa7   : > { %v145_v57 = vadd.f32 %v124_v36, %v121_v32 }
  0xa8   : > { %v141_v39 = vmax.f32 %v138_v37, 0.0  ;;  %v130_v40 = vmul.f32 %v127_v38, %v127_v38  ;;  %v136_v63 = vadd.f32 %v133_v56, %v2315_v1 }
  0xaa   : > { %2064 = vrsqrt.f32 %v141_v39  ;;  %v139_v41 = vsub.f32 %v2335_v8, %v130_v40  ;;  %vm149_vm10 = vcmp.eq.f32.partialorder %v141_v39, inf  ;;  %v152_v46 = vand.u32 2147483648, %v141_v39 }
  0xab   : > { %vm151_vm11 = vcmp.eq.f32.partialorder %v141_v39, 0.0  ;;  %vm175_vm15 = vcmp.ge.f32.partialorder %v130_v40, %v2323_v4 }
  0xac   : > { %v142_v42 = vmax.f32 %v139_v41, 0.0 }
  0xae   : > { %2066 = vrsqrt.f32 %v142_v42  ;;  %vm156_vm13 = vcmp.eq.f32.partialorder %v142_v42, inf  ;;  %v159_v55 = vand.u32 2147483648, %v142_v42  ;;  %vm158_vm14 = vcmp.eq.f32.partialorder %v142_v42, 0.0 }
  0xb4   : > { %v2065_v43 = vpop.eup %2064 }
  0xb5   : > { %v148_v44 = vmul.f32 %v2065_v43, %v141_v39 }
  0xb7   : > { %v150_v48 = vsel %vm149_vm10, %v141_v39, %v148_v44 }
  0xb8   : > { %v153_v49 = vsel %vm151_vm11, %v152_v46, %v150_v48  ;;  %v2067_v50 = vpop.eup %2066 }
  0xb9   : > { %v168_v51 = vadd.f32 %v153_v49, %v144_v47  ;;  %v155_v53 = vmul.f32 %v2067_v50, %v142_v42 }
  0xbb   : > { %v171_v54 = vmul.f32 0.5, %v168_v51  ;;  %v157_v58 = vsel %vm156_vm13, %v142_v42, %v155_v53 }
  0xbc   : > { %v160_v59 = vsel %vm158_vm14, %v159_v55, %v157_v58 }
  0xbd   : > { %v177_v60 = vsel %vm174_vm12, %v135_v52, %v171_v54  ;;  %v169_v61 = vadd.f32 %v160_v59, %v145_v57 }
  0xbe   : > { %v180_v62 = vmin.f32 %v2238_v14, %v177_v60 }
  0xbf   : > { %v172_v2 = vmul.f32 0.5, %v169_v61 }
  0xc0   : > { %v2399_v11 = vsel %vm66_vm0, 1e+09, %v180_v62 }
  0xc1   : > { %198 = vrot.lane.b32.xlu0 %v2399_v11, %s2250_s19  ;;  %v178_v12 = vsel %vm175_vm15, %v136_v63, %v172_v2  ;;  %v186_v18 = vrot.slane %v2399_v11, 7  ;;  %v192_v19 = vrot.slane %v2399_v11, 1 }
  0xc2   : > { %v181_v16 = vmin.f32 %v2234_v15, %v178_v12 }
  0xc3   : > { %v191_v26 = vsel %vm97_vm8, %v2418_v21, %v186_v18 }
  0xc4   : > { %v2407_v17 = vsel %vm66_vm0, 1e+09, %v181_v16 }
  0xc5   : > { %204 = vrot.lane.b32.xlu0 %v2399_v11, %s2249_s18  ;;  %200 = vrot.lane.b32.xlu1 %v2407_v17, %s2250_s19  ;;  %v193_v14 = vrot.slane %v2407_v17, 1  ;;  %v187_v23 = vrot.slane %v2407_v17, 7 }
  0xc7   : > { %v196_v22 = vsel %vm104_vm9, %v192_v19, %v193_v14  ;;  %v190_v31 = vsel %vm97_vm8, %v186_v18, %v187_v23  ;;  %v195_v32 = vsel %vm104_vm9, %v193_v14, %v2423_v24 }
  0xc8   : > { %v210_v28 = vmin.f32 %v191_v26, %v196_v22  ;;  %v211_v35 = vmin.f32 %v190_v31, %v195_v32 }
  0xc9   : > { %206 = vrot.lane.b32.xlu1 %v2407_v17, %s2249_s18 }
 0x133   : > { %v199_v15 = vpop.permute.xlu0 %198 }
 0x137   : > { %v205_v25 = vpop.permute.xlu0 %204  ;;  %v201_v27 = vpop.permute.xlu1 %200 }
 0x138   : > { %v213_v29 = vmin.f32 %v199_v15, %v205_v25 }
 0x13a   : > { %v216_v30 = vsub.f32 %v210_v28, %v213_v29  ;;  %v222_v45 = vmin.f32 %v210_v28, %v213_v29  ;;  %v234_v47 = vadd.f32 %v213_v29, %v210_v28 }
 0x13b   : > { %v207_v34 = vpop.permute.xlu1 %206 }
 0x13c   : > { %v219_v33 = vmul.f32 %v216_v30, %v216_v30  ;;  %v214_v36 = vmin.f32 %v201_v27, %v207_v34  ;;  %v225_v52 = vadd.f32 %v222_v45, %v2313_v0 }
 0x13e   : > { %v228_v37 = vsub.f32 %v2331_v7, %v219_v33  ;;  %v217_v38 = vsub.f32 %v211_v35, %v214_v36  ;;  %vm264_vm3 = vcmp.ge.f32.partialorder %v219_v33, %v2319_v3  ;;  %v223_v56 = vmin.f32 %v211_v35, %v214_v36 }
 0x13f   : > { %v235_v57 = vadd.f32 %v214_v36, %v211_v35 }
 0x140   : > { %v231_v39 = vmax.f32 %v228_v37, 0.0  ;;  %v220_v40 = vmul.f32 %v217_v38, %v217_v38  ;;  %v226_v63 = vadd.f32 %v223_v56, %v2315_v1 }
 0x142   : > { %2068 = vrsqrt.f32 %v231_v39  ;;  %v229_v41 = vsub.f32 %v2335_v8, %v220_v40  ;;  %vm239_vm1 = vcmp.eq.f32.partialorder %v231_v39, inf  ;;  %v242_v46 = vand.u32 2147483648, %v231_v39 }
 0x143   : > { %vm241_vm2 = vcmp.eq.f32.partialorder %v231_v39, 0.0  ;;  %vm265_vm6 = vcmp.ge.f32.partialorder %v220_v40, %v2323_v4 }
 0x144   : > { %v232_v42 = vmax.f32 %v229_v41, 0.0 }
 0x146   : > { %2070 = vrsqrt.f32 %v232_v42  ;;  %vm246_vm4 = vcmp.eq.f32.partialorder %v232_v42, inf  ;;  %v249_v55 = vand.u32 2147483648, %v232_v42  ;;  %vm248_vm5 = vcmp.eq.f32.partialorder %v232_v42, 0.0 }
 0x14c   : > { %v2069_v43 = vpop.eup %2068 }
 0x14d   : > { %v238_v44 = vmul.f32 %v2069_v43, %v231_v39 }
 0x14f   : > { %v240_v48 = vsel %vm239_vm1, %v231_v39, %v238_v44 }
 0x150   : > { %v243_v49 = vsel %vm241_vm2, %v242_v46, %v240_v48  ;;  %v2071_v50 = vpop.eup %2070 }
 0x151   : > { %v258_v51 = vadd.f32 %v243_v49, %v234_v47  ;;  %v245_v53 = vmul.f32 %v2071_v50, %v232_v42 }
 0x153   : > { %v261_v54 = vmul.f32 0.5, %v258_v51  ;;  %v247_v58 = vsel %vm246_vm4, %v232_v42, %v245_v53 }
 0x154   : > { %v250_v59 = vsel %vm248_vm5, %v249_v55, %v247_v58 }
 0x155   : > { %v267_v60 = vsel %vm264_vm3, %v225_v52, %v261_v54  ;;  %v259_v61 = vadd.f32 %v250_v59, %v235_v57 }
 0x156   : > { %v270_v62 = vmin.f32 %v2399_v11, %v267_v60 }
 0x157   : > { %v262_v2 = vmul.f32 0.5, %v259_v61 }
 0x158   : > { %v2441_v12 = vsel %vm66_vm0, 1e+09, %v270_v62 }
 0x159   : > { %288 = vrot.lane.b32.xlu0 %v2441_v12, %s2250_s19  ;;  %v268_v16 = vsel %vm265_vm6, %v226_v63, %v262_v2  ;;  %v276_v19 = vrot.slane %v2441_v12, 7  ;;  %v282_v15 = vrot.slane %v2441_v12, 1 }
 0x15a   : > { %v271_v14 = vmin.f32 %v2407_v17, %v268_v16 }
 0x15b   : > { %v281_v25 = vsel %vm97_vm8, %v2418_v21, %v276_v19 }
 0x15c   : > { %v2451_v11 = vsel %vm66_vm0, 1e+09, %v271_v14 }
 0x15d   : > { %294 = vrot.lane.b32.xlu0 %v2441_v12, %s2249_s18  ;;  %290 = vrot.lane.b32.xlu1 %v2451_v11, %s2250_s19  ;;  %v283_v18 = vrot.slane %v2451_v11, 1  ;;  %v277_v22 = vrot.slane %v2451_v11, 7 }
 0x15f   : > { %v286_v20 = vsel %vm104_vm9, %v282_v15, %v283_v18  ;;  %v280_v30 = vsel %vm97_vm8, %v276_v19, %v277_v22  ;;  %v285_v31 = vsel %vm104_vm9, %v283_v18, %v2423_v24 }
 0x160   : > { %v300_v26 = vmin.f32 %v281_v25, %v286_v20  ;;  %v301_v34 = vmin.f32 %v280_v30, %v285_v31 }
 0x161   : > { %296 = vrot.lane.b32.xlu1 %v2451_v11, %s2249_s18 }
 0x1cb   : > { %v289_v17 = vpop.permute.xlu0 %288 }
 0x1cf   : > { %v295_v23 = vpop.permute.xlu0 %294  ;;  %v291_v28 = vpop.permute.xlu1 %290 }
 0x1d0   : > { %v303_v27 = vmin.f32 %v289_v17, %v295_v23 }
 0x1d2   : > { %v306_v29 = vsub.f32 %v300_v26, %v303_v27  ;;  %v312_v44 = vmin.f32 %v300_v26, %v303_v27  ;;  %v324_v46 = vadd.f32 %v303_v27, %v300_v26 }
 0x1d3   : > { %v297_v33 = vpop.permute.xlu1 %296 }
 0x1d4   : > { %v309_v32 = vmul.f32 %v306_v29, %v306_v29  ;;  %v304_v35 = vmin.f32 %v291_v28, %v297_v33  ;;  %v315_v51 = vadd.f32 %v312_v44, %v2313_v0 }
 0x1d6   : > { %v318_v36 = vsub.f32 %v2331_v7, %v309_v32  ;;  %v307_v37 = vsub.f32 %v301_v34, %v304_v35  ;;  %vm354_vm11 = vcmp.ge.f32.partialorder %v309_v32, %v2319_v3  ;;  %v313_v55 = vmin.f32 %v301_v34, %v304_v35 }
 0x1d7   : > { %v325_v56 = vadd.f32 %v304_v35, %v301_v34 }
 0x1d8   : > { %v321_v38 = vmax.f32 %v318_v36, 0.0  ;;  %v310_v39 = vmul.f32 %v307_v37, %v307_v37  ;;  %v316_v62 = vadd.f32 %v313_v55, %v2315_v1 }
 0x1da   : > { %2072 = vrsqrt.f32 %v321_v38  ;;  %v319_v40 = vsub.f32 %v2335_v8, %v310_v39  ;;  %vm329_vm7 = vcmp.eq.f32.partialorder %v321_v38, inf  ;;  %v332_v45 = vand.u32 2147483648, %v321_v38 }
 0x1db   : > { %vm331_vm10 = vcmp.eq.f32.partialorder %v321_v38, 0.0  ;;  %vm355_vm14 = vcmp.ge.f32.partialorder %v310_v39, %v2323_v4 }
 0x1dc   : > { %v322_v41 = vmax.f32 %v319_v40, 0.0 }
 0x1de   : > { %2074 = vrsqrt.f32 %v322_v41  ;;  %vm336_vm12 = vcmp.eq.f32.partialorder %v322_v41, inf  ;;  %v339_v54 = vand.u32 2147483648, %v322_v41  ;;  %vm338_vm13 = vcmp.eq.f32.partialorder %v322_v41, 0.0 }
 0x1e4   : > { %v2073_v42 = vpop.eup %2072 }
 0x1e5   : > { %v328_v43 = vmul.f32 %v2073_v42, %v321_v38 }
 0x1e7   : > { %v330_v47 = vsel %vm329_vm7, %v321_v38, %v328_v43 }
 0x1e8   : > { %v333_v48 = vsel %vm331_vm10, %v332_v45, %v330_v47  ;;  %v2075_v49 = vpop.eup %2074 }
 0x1e9   : > { %v348_v50 = vadd.f32 %v333_v48, %v324_v46  ;;  %v335_v52 = vmul.f32 %v2075_v49, %v322_v41 }
 0x1eb   : > { %v351_v53 = vmul.f32 0.5, %v348_v50  ;;  %v337_v57 = vsel %vm336_vm12, %v322_v41, %v335_v52 }
 0x1ec   : > { %v340_v58 = vsel %vm338_vm13, %v339_v54, %v337_v57 }
 0x1ed   : > { %v357_v59 = vsel %vm354_vm11, %v315_v51, %v351_v53  ;;  %v349_v60 = vadd.f32 %v340_v58, %v325_v56 }
 0x1ee   : > { %v360_v61 = vmin.f32 %v2441_v12, %v357_v59 }
 0x1ef   : > { %v352_v63 = vmul.f32 0.5, %v349_v60 }
 0x1f0   : > { %v2479_v2 = vsel %vm66_vm0, 1e+09, %v360_v61 }
 0x1f1   : > { %378 = vrot.lane.b32.xlu0 %v2479_v2, %s2250_s19  ;;  %v358_v16 = vsel %vm355_vm14, %v316_v62, %v352_v63  ;;  %v366_v19 = vrot.slane %v2479_v2, 7  ;;  %v372_v15 = vrot.slane %v2479_v2, 1 }
 0x1f2   : > { %v361_v14 = vmin.f32 %v2451_v11, %v358_v16 }
 0x1f3   : > { %v371_v23 = vsel %vm97_vm8, %v2418_v21, %v366_v19 }
 0x1f4   : > { %v2489_v12 = vsel %vm66_vm0, 1e+09, %v361_v14 }
 0x1f5   : > { %384 = vrot.lane.b32.xlu0 %v2479_v2, %s2249_s18  ;;  %380 = vrot.lane.b32.xlu1 %v2489_v12, %s2250_s19  ;;  %v373_v18 = vrot.slane %v2489_v12, 1  ;;  %v367_v20 = vrot.slane %v2489_v12, 7 }
 0x1f7   : > { %v376_v17 = vsel %vm104_vm9, %v372_v15, %v373_v18  ;;  %v370_v29 = vsel %vm97_vm8, %v366_v19, %v367_v20  ;;  %v375_v30 = vsel %vm104_vm9, %v373_v18, %v2423_v24 }
 0x1f8   : > { %v390_v25 = vmin.f32 %v371_v23, %v376_v17  ;;  %v391_v33 = vmin.f32 %v370_v29, %v375_v30 }
 0x1f9   : > { %386 = vrot.lane.b32.xlu1 %v2489_v12, %s2249_s18 }
 0x263   : > { %v379_v11 = vpop.permute.xlu0 %378 }
 0x267   : > { %v385_v22 = vpop.permute.xlu0 %384  ;;  %v381_v27 = vpop.permute.xlu1 %380 }
 0x268   : > { %v393_v26 = vmin.f32 %v379_v11, %v385_v22 }
 0x26a   : > { %v396_v28 = vsub.f32 %v390_v25, %v393_v26  ;;  %v402_v43 = vmin.f32 %v390_v25, %v393_v26  ;;  %v414_v45 = vadd.f32 %v393_v26, %v390_v25 }
 0x26b   : > { %v387_v32 = vpop.permute.xlu1 %386 }
 0x26c   : > { %v399_v31 = vmul.f32 %v396_v28, %v396_v28  ;;  %v394_v34 = vmin.f32 %v381_v27, %v387_v32  ;;  %v405_v50 = vadd.f32 %v402_v43, %v2313_v0 }
 0x26e   : > { %v408_v35 = vsub.f32 %v2331_v7, %v399_v31  ;;  %v397_v36 = vsub.f32 %v391_v33, %v394_v34  ;;  %vm444_vm2 = vcmp.ge.f32.partialorder %v399_v31, %v2319_v3  ;;  %v403_v54 = vmin.f32 %v391_v33, %v394_v34 }
 0x26f   : > { %v415_v55 = vadd.f32 %v394_v34, %v391_v33 }
 0x270   : > { %v411_v37 = vmax.f32 %v408_v35, 0.0  ;;  %v400_v38 = vmul.f32 %v397_v36, %v397_v36  ;;  %v406_v61 = vadd.f32 %v403_v54, %v2315_v1 }
 0x272   : > { %2076 = vrsqrt.f32 %v411_v37  ;;  %v409_v39 = vsub.f32 %v2335_v8, %v400_v38  ;;  %vm419_vm15 = vcmp.eq.f32.partialorder %v411_v37, inf  ;;  %v422_v44 = vand.u32 2147483648, %v411_v37 }
 0x273   : > { %vm421_vm1 = vcmp.eq.f32.partialorder %v411_v37, 0.0  ;;  %vm445_vm5 = vcmp.ge.f32.partialorder %v400_v38, %v2323_v4 }
 0x274   : > { %v412_v40 = vmax.f32 %v409_v39, 0.0 }
 0x276   : > { %2078 = vrsqrt.f32 %v412_v40  ;;  %vm426_vm3 = vcmp.eq.f32.partialorder %v412_v40, inf  ;;  %v429_v53 = vand.u32 2147483648, %v412_v40  ;;  %vm428_vm4 = vcmp.eq.f32.partialorder %v412_v40, 0.0 }
 0x27c   : > { %v2077_v41 = vpop.eup %2076 }
 0x27d   : > { %v418_v42 = vmul.f32 %v2077_v41, %v411_v37 }
 0x27f   : > { %v420_v46 = vsel %vm419_vm15, %v411_v37, %v418_v42 }
 0x280   : > { %v423_v47 = vsel %vm421_vm1, %v422_v44, %v420_v46  ;;  %v2079_v48 = vpop.eup %2078 }
 0x281   : > { %v438_v49 = vadd.f32 %v423_v47, %v414_v45  ;;  %v425_v51 = vmul.f32 %v2079_v48, %v412_v40 }
 0x283   : > { %v441_v52 = vmul.f32 0.5, %v438_v49  ;;  %v427_v56 = vsel %vm426_vm3, %v412_v40, %v425_v51 }
 0x284   : > { %v430_v57 = vsel %vm428_vm4, %v429_v53, %v427_v56 }
 0x285   : > { %v447_v58 = vsel %vm444_vm2, %v405_v50, %v441_v52  ;;  %v439_v59 = vadd.f32 %v430_v57, %v415_v55 }
 0x286   : > { %v450_v60 = vmin.f32 %v2479_v2, %v447_v58 }
 0x287   : > { %v442_v62 = vmul.f32 0.5, %v439_v59 }
 0x288   : > { %v2517_v63 = vsel %vm66_vm0, 1e+09, %v450_v60 }
 0x289   : > { %468 = vrot.lane.b32.xlu0 %v2517_v63, %s2250_s19  ;;  %v448_v16 = vsel %vm445_vm5, %v406_v61, %v442_v62  ;;  %v456_v19 = vrot.slane %v2517_v63, 7  ;;  %v462_v15 = vrot.slane %v2517_v63, 1 }
 0x28a   : > { %v451_v14 = vmin.f32 %v2489_v12, %v448_v16 }
 0x28b   : > { %v461_v22 = vsel %vm97_vm8, %v2418_v21, %v456_v19 }
 0x28c   : > { %v2527_v2 = vsel %vm66_vm0, 1e+09, %v451_v14 }
 0x28d   : > { %474 = vrot.lane.b32.xlu0 %v2517_v63, %s2249_s18  ;;  %470 = vrot.lane.b32.xlu1 %v2527_v2, %s2250_s19  ;;  %v463_v18 = vrot.slane %v2527_v2, 1  ;;  %v457_v17 = vrot.slane %v2527_v2, 7 }
 0x28f   : > { %v466_v11 = vsel %vm104_vm9, %v462_v15, %v463_v18  ;;  %v460_v28 = vsel %vm97_vm8, %v456_v19, %v457_v17  ;;  %v465_v29 = vsel %vm104_vm9, %v463_v18, %v2423_v24 }
 0x290   : > { %v480_v23 = vmin.f32 %v461_v22, %v466_v11  ;;  %v481_v32 = vmin.f32 %v460_v28, %v465_v29 }
 0x291   : > { %476 = vrot.lane.b32.xlu1 %v2527_v2, %s2249_s18 }
 0x2fb   : > { %v469_v12 = vpop.permute.xlu0 %468 }
 0x2ff   : > { %v475_v20 = vpop.permute.xlu0 %474  ;;  %v471_v26 = vpop.permute.xlu1 %470 }
 0x300   : > { %v483_v25 = vmin.f32 %v469_v12, %v475_v20 }
 0x302   : > { %v486_v27 = vsub.f32 %v480_v23, %v483_v25  ;;  %v492_v42 = vmin.f32 %v480_v23, %v483_v25  ;;  %v504_v44 = vadd.f32 %v483_v25, %v480_v23 }
 0x303   : > { %v477_v31 = vpop.permute.xlu1 %476 }
 0x304   : > { %v489_v30 = vmul.f32 %v486_v27, %v486_v27  ;;  %v484_v33 = vmin.f32 %v471_v26, %v477_v31  ;;  %v495_v49 = vadd.f32 %v492_v42, %v2313_v0 }
 0x306   : > { %v498_v34 = vsub.f32 %v2331_v7, %v489_v30  ;;  %v487_v35 = vsub.f32 %v481_v32, %v484_v33  ;;  %vm534_vm10 = vcmp.ge.f32.partialorder %v489_v30, %v2319_v3  ;;  %v493_v53 = vmin.f32 %v481_v32, %v484_v33 }
 0x307   : > { %v505_v54 = vadd.f32 %v484_v33, %v481_v32 }
 0x308   : > { %v501_v36 = vmax.f32 %v498_v34, 0.0  ;;  %v490_v37 = vmul.f32 %v487_v35, %v487_v35  ;;  %v496_v60 = vadd.f32 %v493_v53, %v2315_v1 }
 0x30a   : > { %2080 = vrsqrt.f32 %v501_v36  ;;  %v499_v38 = vsub.f32 %v2335_v8, %v490_v37  ;;  %vm509_vm6 = vcmp.eq.f32.partialorder %v501_v36, inf  ;;  %v512_v43 = vand.u32 2147483648, %v501_v36 }
 0x30b   : > { %vm511_vm7 = vcmp.eq.f32.partialorder %v501_v36, 0.0  ;;  %vm535_vm13 = vcmp.ge.f32.partialorder %v490_v37, %v2323_v4 }
 0x30c   : > { %v502_v39 = vmax.f32 %v499_v38, 0.0 }
 0x30e   : > { %2082 = vrsqrt.f32 %v502_v39  ;;  %vm516_vm11 = vcmp.eq.f32.partialorder %v502_v39, inf  ;;  %v519_v52 = vand.u32 2147483648, %v502_v39  ;;  %vm518_vm12 = vcmp.eq.f32.partialorder %v502_v39, 0.0 }
 0x314   : > { %v2081_v40 = vpop.eup %2080 }
 0x315   : > { %v508_v41 = vmul.f32 %v2081_v40, %v501_v36 }
 0x317   : > { %v510_v45 = vsel %vm509_vm6, %v501_v36, %v508_v41 }
 0x318   : > { %v513_v46 = vsel %vm511_vm7, %v512_v43, %v510_v45  ;;  %v2083_v47 = vpop.eup %2082 }
 0x319   : > { %v528_v48 = vadd.f32 %v513_v46, %v504_v44  ;;  %v515_v50 = vmul.f32 %v2083_v47, %v502_v39 }
 0x31b   : > { %v531_v51 = vmul.f32 0.5, %v528_v48  ;;  %v517_v55 = vsel %vm516_vm11, %v502_v39, %v515_v50 }
 0x31c   : > { %v520_v56 = vsel %vm518_vm12, %v519_v52, %v517_v55 }
 0x31d   : > { %v537_v57 = vsel %vm534_vm10, %v495_v49, %v531_v51  ;;  %v529_v58 = vadd.f32 %v520_v56, %v505_v54 }
 0x31e   : > { %v540_v59 = vmin.f32 %v2517_v63, %v537_v57 }
 0x31f   : > { %v532_v61 = vmul.f32 0.5, %v529_v58 }
 0x320   : > { %v2555_v62 = vsel %vm66_vm0, 1e+09, %v540_v59 }
 0x321   : > { %558 = vrot.lane.b32.xlu0 %v2555_v62, %s2250_s19  ;;  %v538_v16 = vsel %vm535_vm13, %v496_v60, %v532_v61  ;;  %v546_v19 = vrot.slane %v2555_v62, 7  ;;  %v552_v15 = vrot.slane %v2555_v62, 1 }
 0x322   : > { %v541_v14 = vmin.f32 %v2527_v2, %v538_v16 }
 0x323   : > { %v551_v20 = vsel %vm97_vm8, %v2418_v21, %v546_v19 }
 0x324   : > { %v2565_v63 = vsel %vm66_vm0, 1e+09, %v541_v14 }
 0x325   : > { %564 = vrot.lane.b32.xlu0 %v2555_v62, %s2249_s18  ;;  %560 = vrot.lane.b32.xlu1 %v2565_v63, %s2250_s19  ;;  %v553_v18 = vrot.slane %v2565_v63, 1  ;;  %v547_v11 = vrot.slane %v2565_v63, 7 }
 0x327   : > { %v556_v12 = vsel %vm104_vm9, %v552_v15, %v553_v18  ;;  %v550_v27 = vsel %vm97_vm8, %v546_v19, %v547_v11  ;;  %v555_v28 = vsel %vm104_vm9, %v553_v18, %v2423_v24 }
 0x328   : > { %v570_v22 = vmin.f32 %v551_v20, %v556_v12  ;;  %v571_v31 = vmin.f32 %v550_v27, %v555_v28 }
 0x329   : > { %566 = vrot.lane.b32.xlu1 %v2565_v63, %s2249_s18 }
 0x393   : > { %v559_v2 = vpop.permute.xlu0 %558 }
 0x397   : > { %v565_v17 = vpop.permute.xlu0 %564  ;;  %v561_v25 = vpop.permute.xlu1 %560 }
 0x398   : > { %v573_v23 = vmin.f32 %v559_v2, %v565_v17 }
 0x39a   : > { %v576_v26 = vsub.f32 %v570_v22, %v573_v23  ;;  %v582_v41 = vmin.f32 %v570_v22, %v573_v23  ;;  %v594_v43 = vadd.f32 %v573_v23, %v570_v22 }
 0x39b   : > { %v567_v30 = vpop.permute.xlu1 %566 }
 0x39c   : > { %v579_v29 = vmul.f32 %v576_v26, %v576_v26  ;;  %v574_v32 = vmin.f32 %v561_v25, %v567_v30  ;;  %v585_v48 = vadd.f32 %v582_v41, %v2313_v0 }
 0x39e   : > { %v588_v33 = vsub.f32 %v2331_v7, %v579_v29  ;;  %v577_v34 = vsub.f32 %v571_v31, %v574_v32  ;;  %vm624_vm1 = vcmp.ge.f32.partialorder %v579_v29, %v2319_v3  ;;  %v583_v52 = vmin.f32 %v571_v31, %v574_v32 }
 0x39f   : > { %v595_v53 = vadd.f32 %v574_v32, %v571_v31 }
 0x3a0   : > { %v591_v35 = vmax.f32 %v588_v33, 0.0  ;;  %v580_v36 = vmul.f32 %v577_v34, %v577_v34  ;;  %v586_v59 = vadd.f32 %v583_v52, %v2315_v1 }
 0x3a2   : > { %2084 = vrsqrt.f32 %v591_v35  ;;  %v589_v37 = vsub.f32 %v2335_v8, %v580_v36  ;;  %vm599_vm14 = vcmp.eq.f32.partialorder %v591_v35, inf  ;;  %v602_v42 = vand.u32 2147483648, %v591_v35 }
 0x3a3   : > { %vm601_vm15 = vcmp.eq.f32.partialorder %v591_v35, 0.0  ;;  %vm625_vm4 = vcmp.ge.f32.partialorder %v580_v36, %v2323_v4 }
 0x3a4   : > { %v592_v38 = vmax.f32 %v589_v37, 0.0 }
 0x3a6   : > { %2086 = vrsqrt.f32 %v592_v38  ;;  %vm606_vm2 = vcmp.eq.f32.partialorder %v592_v38, inf  ;;  %v609_v51 = vand.u32 2147483648, %v592_v38  ;;  %vm608_vm3 = vcmp.eq.f32.partialorder %v592_v38, 0.0 }
 0x3ac   : > { %v2085_v39 = vpop.eup %2084 }
 0x3ad   : > { %v598_v40 = vmul.f32 %v2085_v39, %v591_v35 }
 0x3af   : > { %v600_v44 = vsel %vm599_vm14, %v591_v35, %v598_v40 }
 0x3b0   : > { %v603_v45 = vsel %vm601_vm15, %v602_v42, %v600_v44  ;;  %v2087_v46 = vpop.eup %2086 }
 0x3b1   : > { %v618_v47 = vadd.f32 %v603_v45, %v594_v43  ;;  %v605_v49 = vmul.f32 %v2087_v46, %v592_v38 }
 0x3b3   : > { %v621_v50 = vmul.f32 0.5, %v618_v47  ;;  %v607_v54 = vsel %vm606_vm2, %v592_v38, %v605_v49 }
 0x3b4   : > { %v610_v55 = vsel %vm608_vm3, %v609_v51, %v607_v54 }
 0x3b5   : > { %v627_v56 = vsel %vm624_vm1, %v585_v48, %v621_v50  ;;  %v619_v57 = vadd.f32 %v610_v55, %v595_v53 }
 0x3b6   : > { %v630_v58 = vmin.f32 %v2555_v62, %v627_v56 }
 0x3b7   : > { %v622_v60 = vmul.f32 0.5, %v619_v57 }
 0x3b8   : > { %v2593_v61 = vsel %vm66_vm0, 1e+09, %v630_v58 }
 0x3b9   : > { %648 = vrot.lane.b32.xlu0 %v2593_v61, %s2250_s19  ;;  %v628_v16 = vsel %vm625_vm4, %v586_v59, %v622_v60  ;;  %v636_v19 = vrot.slane %v2593_v61, 7  ;;  %v642_v15 = vrot.slane %v2593_v61, 1 }
 0x3ba   : > { %v631_v14 = vmin.f32 %v2565_v63, %v628_v16 }
 0x3bb   : > { %v641_v17 = vsel %vm97_vm8, %v2418_v21, %v636_v19 }
 0x3bc   : > { %v2603_v62 = vsel %vm66_vm0, 1e+09, %v631_v14 }
 0x3bd   : > { %654 = vrot.lane.b32.xlu0 %v2593_v61, %s2249_s18  ;;  %650 = vrot.lane.b32.xlu1 %v2603_v62, %s2250_s19  ;;  %v643_v18 = vrot.slane %v2603_v62, 1  ;;  %v637_v12 = vrot.slane %v2603_v62, 7 }
 0x3bf   : > { %v646_v2 = vsel %vm104_vm9, %v642_v15, %v643_v18  ;;  %v640_v26 = vsel %vm97_vm8, %v636_v19, %v637_v12  ;;  %v645_v27 = vsel %vm104_vm9, %v643_v18, %v2423_v24 }
 0x3c0   : > { %v660_v20 = vmin.f32 %v641_v17, %v646_v2  ;;  %v661_v30 = vmin.f32 %v640_v26, %v645_v27 }
 0x3c1   : > { %656 = vrot.lane.b32.xlu1 %v2603_v62, %s2249_s18 }
 0x42b   : > { %v649_v63 = vpop.permute.xlu0 %648 }
 0x42f   : > { %v655_v11 = vpop.permute.xlu0 %654  ;;  %v651_v23 = vpop.permute.xlu1 %650 }
 0x430   : > { %v663_v22 = vmin.f32 %v649_v63, %v655_v11 }
 0x432   : > { %v666_v25 = vsub.f32 %v660_v20, %v663_v22  ;;  %v672_v40 = vmin.f32 %v660_v20, %v663_v22  ;;  %v684_v42 = vadd.f32 %v663_v22, %v660_v20 }
 0x433   : > { %v657_v29 = vpop.permute.xlu1 %656 }
 0x434   : > { %v669_v28 = vmul.f32 %v666_v25, %v666_v25  ;;  %v664_v31 = vmin.f32 %v651_v23, %v657_v29  ;;  %v675_v47 = vadd.f32 %v672_v40, %v2313_v0 }
 0x436   : > { %v678_v32 = vsub.f32 %v2331_v7, %v669_v28  ;;  %v667_v33 = vsub.f32 %v661_v30, %v664_v31  ;;  %vm714_vm7 = vcmp.ge.f32.partialorder %v669_v28, %v2319_v3  ;;  %v673_v51 = vmin.f32 %v661_v30, %v664_v31 }
 0x437   : > { %v685_v52 = vadd.f32 %v664_v31, %v661_v30 }
 0x438   : > { %v681_v34 = vmax.f32 %v678_v32, 0.0  ;;  %v670_v35 = vmul.f32 %v667_v33, %v667_v33  ;;  %v676_v58 = vadd.f32 %v673_v51, %v2315_v1 }
 0x43a   : > { %2088 = vrsqrt.f32 %v681_v34  ;;  %v679_v36 = vsub.f32 %v2335_v8, %v670_v35  ;;  %vm689_vm5 = vcmp.eq.f32.partialorder %v681_v34, inf  ;;  %v692_v41 = vand.u32 2147483648, %v681_v34 }
 0x43b   : > { %vm691_vm6 = vcmp.eq.f32.partialorder %v681_v34, 0.0  ;;  %vm715_vm12 = vcmp.ge.f32.partialorder %v670_v35, %v2323_v4 }
 0x43c   : > { %v682_v37 = vmax.f32 %v679_v36, 0.0 }
 0x43e   : > { %2090 = vrsqrt.f32 %v682_v37  ;;  %vm696_vm10 = vcmp.eq.f32.partialorder %v682_v37, inf  ;;  %v699_v50 = vand.u32 2147483648, %v682_v37  ;;  %vm698_vm11 = vcmp.eq.f32.partialorder %v682_v37, 0.0 }
 0x444   : > { %v2089_v38 = vpop.eup %2088 }
 0x445   : > { %v688_v39 = vmul.f32 %v2089_v38, %v681_v34 }
 0x447   : > { %v690_v43 = vsel %vm689_vm5, %v681_v34, %v688_v39 }
 0x448   : > { %v693_v44 = vsel %vm691_vm6, %v692_v41, %v690_v43  ;;  %v2091_v45 = vpop.eup %2090 }
 0x449   : > { %v708_v46 = vadd.f32 %v693_v44, %v684_v42  ;;  %v695_v48 = vmul.f32 %v2091_v45, %v682_v37 }
 0x44b   : > { %v711_v49 = vmul.f32 0.5, %v708_v46  ;;  %v697_v53 = vsel %vm696_vm10, %v682_v37, %v695_v48 }
 0x44c   : > { %v700_v54 = vsel %vm698_vm11, %v699_v50, %v697_v53 }
 0x44d   : > { %v717_v55 = vsel %vm714_vm7, %v675_v47, %v711_v49  ;;  %v709_v56 = vadd.f32 %v700_v54, %v685_v52 }
 0x44e   : > { %v720_v57 = vmin.f32 %v2593_v61, %v717_v55 }
 0x44f   : > { %v712_v59 = vmul.f32 0.5, %v709_v56 }
 0x450   : > { %v2631_v60 = vsel %vm66_vm0, 1e+09, %v720_v57 }
 0x451   : > { %738 = vrot.lane.b32.xlu0 %v2631_v60, %s2250_s19  ;;  %v718_v16 = vsel %vm715_vm12, %v676_v58, %v712_v59  ;;  %v726_v19 = vrot.slane %v2631_v60, 7  ;;  %v732_v15 = vrot.slane %v2631_v60, 1 }
 0x452   : > { %v721_v14 = vmin.f32 %v2603_v62, %v718_v16 }
 0x453   : > { %v731_v11 = vsel %vm97_vm8, %v2418_v21, %v726_v19 }
 0x454   : > { %v2641_v61 = vsel %vm66_vm0, 1e+09, %v721_v14 }
 0x455   : > { %744 = vrot.lane.b32.xlu0 %v2631_v60, %s2249_s18  ;;  %740 = vrot.lane.b32.xlu1 %v2641_v61, %s2250_s19  ;;  %v733_v18 = vrot.slane %v2641_v61, 1  ;;  %v727_v2 = vrot.slane %v2641_v61, 7 }
 0x457   : > { %v736_v63 = vsel %vm104_vm9, %v732_v15, %v733_v18  ;;  %v730_v25 = vsel %vm97_vm8, %v726_v19, %v727_v2  ;;  %v735_v26 = vsel %vm104_vm9, %v733_v18, %v2423_v24 }
 0x458   : > { %v750_v17 = vmin.f32 %v731_v11, %v736_v63  ;;  %v751_v29 = vmin.f32 %v730_v25, %v735_v26 }
 0x459   : > { %746 = vrot.lane.b32.xlu1 %v2641_v61, %s2249_s18 }
 0x4c3   : > { %v739_v62 = vpop.permute.xlu0 %738 }
 0x4c7   : > { %v745_v12 = vpop.permute.xlu0 %744  ;;  %v741_v22 = vpop.permute.xlu1 %740 }
 0x4c8   : > { %v753_v20 = vmin.f32 %v739_v62, %v745_v12 }
 0x4ca   : > { %v756_v23 = vsub.f32 %v750_v17, %v753_v20  ;;  %v762_v39 = vmin.f32 %v750_v17, %v753_v20  ;;  %v774_v41 = vadd.f32 %v753_v20, %v750_v17 }
 0x4cb   : > { %v747_v28 = vpop.permute.xlu1 %746 }
 0x4cc   : > { %v759_v27 = vmul.f32 %v756_v23, %v756_v23  ;;  %v754_v30 = vmin.f32 %v741_v22, %v747_v28  ;;  %v765_v46 = vadd.f32 %v762_v39, %v2313_v0 }
 0x4ce   : > { %v768_v31 = vsub.f32 %v2331_v7, %v759_v27  ;;  %v757_v32 = vsub.f32 %v751_v29, %v754_v30  ;;  %vm804_vm15 = vcmp.ge.f32.partialorder %v759_v27, %v2319_v3  ;;  %v763_v50 = vmin.f32 %v751_v29, %v754_v30 }
 0x4cf   : > { %v775_v51 = vadd.f32 %v754_v30, %v751_v29 }
 0x4d0   : > { %v771_v33 = vmax.f32 %v768_v31, 0.0  ;;  %v760_v34 = vmul.f32 %v757_v32, %v757_v32  ;;  %v766_v57 = vadd.f32 %v763_v50, %v2315_v1 }
 0x4d2   : > { %2092 = vrsqrt.f32 %v771_v33  ;;  %v769_v35 = vsub.f32 %v2335_v8, %v760_v34  ;;  %vm779_vm13 = vcmp.eq.f32.partialorder %v771_v33, inf  ;;  %v782_v40 = vand.u32 2147483648, %v771_v33 }
 0x4d3   : > { %vm781_vm14 = vcmp.eq.f32.partialorder %v771_v33, 0.0  ;;  %vm805_vm3 = vcmp.ge.f32.partialorder %v760_v34, %v2323_v4 }
 0x4d4   : > { %v772_v36 = vmax.f32 %v769_v35, 0.0 }
 0x4d6   : > { %2094 = vrsqrt.f32 %v772_v36  ;;  %vm786_vm1 = vcmp.eq.f32.partialorder %v772_v36, inf  ;;  %v789_v49 = vand.u32 2147483648, %v772_v36  ;;  %vm788_vm2 = vcmp.eq.f32.partialorder %v772_v36, 0.0 }
 0x4dc   : > { %v2093_v37 = vpop.eup %2092 }
 0x4dd   : > { %v778_v38 = vmul.f32 %v2093_v37, %v771_v33 }
 0x4df   : > { %v780_v42 = vsel %vm779_vm13, %v771_v33, %v778_v38 }
 0x4e0   : > { %v783_v43 = vsel %vm781_vm14, %v782_v40, %v780_v42  ;;  %v2095_v44 = vpop.eup %2094 }
 0x4e1   : > { %v798_v45 = vadd.f32 %v783_v43, %v774_v41  ;;  %v785_v47 = vmul.f32 %v2095_v44, %v772_v36 }
 0x4e3   : > { %v801_v48 = vmul.f32 0.5, %v798_v45  ;;  %v787_v52 = vsel %vm786_vm1, %v772_v36, %v785_v47 }
 0x4e4   : > { %v790_v53 = vsel %vm788_vm2, %v789_v49, %v787_v52 }
 0x4e5   : > { %v807_v54 = vsel %vm804_vm15, %v765_v46, %v801_v48  ;;  %v799_v55 = vadd.f32 %v790_v53, %v775_v51 }
 0x4e6   : > { %v810_v56 = vmin.f32 %v2631_v60, %v807_v54 }
 0x4e7   : > { %v802_v58 = vmul.f32 0.5, %v799_v55 }
 0x4e8   : > { %v2669_v59 = vsel %vm66_vm0, 1e+09, %v810_v56 }
 0x4e9   : > { %828 = vrot.lane.b32.xlu0 %v2669_v59, %s2250_s19  ;;  %v808_v16 = vsel %vm805_vm3, %v766_v57, %v802_v58  ;;  %v816_v19 = vrot.slane %v2669_v59, 7  ;;  %v822_v15 = vrot.slane %v2669_v59, 1 }
 0x4ea   : > { %v811_v14 = vmin.f32 %v2641_v61, %v808_v16 }
 0x4eb   : > { %v821_v12 = vsel %vm97_vm8, %v2418_v21, %v816_v19 }
 0x4ec   : > { %v2679_v60 = vsel %vm66_vm0, 1e+09, %v811_v14 }
 0x4ed   : > { %834 = vrot.lane.b32.xlu0 %v2669_v59, %s2249_s18  ;;  %830 = vrot.lane.b32.xlu1 %v2679_v60, %s2250_s19  ;;  %v823_v18 = vrot.slane %v2679_v60, 1  ;;  %v817_v63 = vrot.slane %v2679_v60, 7 }
 0x4ef   : > { %v826_v62 = vsel %vm104_vm9, %v822_v15, %v823_v18  ;;  %v820_v23 = vsel %vm97_vm8, %v816_v19, %v817_v63  ;;  %v825_v25 = vsel %vm104_vm9, %v823_v18, %v2423_v24 }
 0x4f0   : > { %v840_v11 = vmin.f32 %v821_v12, %v826_v62  ;;  %v841_v28 = vmin.f32 %v820_v23, %v825_v25 }
 0x4f1   : > { %836 = vrot.lane.b32.xlu1 %v2679_v60, %s2249_s18 }
 0x55b   : > { %v829_v61 = vpop.permute.xlu0 %828 }
 0x55f   : > { %v835_v2 = vpop.permute.xlu0 %834  ;;  %v831_v20 = vpop.permute.xlu1 %830 }
 0x560   : > { %v843_v17 = vmin.f32 %v829_v61, %v835_v2 }
 0x562   : > { %v846_v22 = vsub.f32 %v840_v11, %v843_v17  ;;  %v852_v38 = vmin.f32 %v840_v11, %v843_v17  ;;  %v864_v40 = vadd.f32 %v843_v17, %v840_v11 }
 0x563   : > { %v837_v27 = vpop.permute.xlu1 %836 }
 0x564   : > { %v849_v26 = vmul.f32 %v846_v22, %v846_v22  ;;  %v844_v29 = vmin.f32 %v831_v20, %v837_v27  ;;  %v855_v45 = vadd.f32 %v852_v38, %v2313_v0 }
 0x566   : > { %v858_v30 = vsub.f32 %v2331_v7, %v849_v26  ;;  %v847_v31 = vsub.f32 %v841_v28, %v844_v29  ;;  %vm894_vm6 = vcmp.ge.f32.partialorder %v849_v26, %v2319_v3  ;;  %v853_v49 = vmin.f32 %v841_v28, %v844_v29 }
 0x567   : > { %v865_v50 = vadd.f32 %v844_v29, %v841_v28 }
 0x568   : > { %v861_v32 = vmax.f32 %v858_v30, 0.0  ;;  %v850_v33 = vmul.f32 %v847_v31, %v847_v31  ;;  %v856_v56 = vadd.f32 %v853_v49, %v2315_v1 }
 0x56a   : > { %2096 = vrsqrt.f32 %v861_v32  ;;  %v859_v34 = vsub.f32 %v2335_v8, %v850_v33  ;;  %vm869_vm4 = vcmp.eq.f32.partialorder %v861_v32, inf  ;;  %v872_v39 = vand.u32 2147483648, %v861_v32 }
 0x56b   : > { %vm871_vm5 = vcmp.eq.f32.partialorder %v861_v32, 0.0  ;;  %vm895_vm11 = vcmp.ge.f32.partialorder %v850_v33, %v2323_v4 }
 0x56c   : > { %v862_v35 = vmax.f32 %v859_v34, 0.0 }
 0x56e   : > { %2098 = vrsqrt.f32 %v862_v35  ;;  %vm876_vm7 = vcmp.eq.f32.partialorder %v862_v35, inf  ;;  %v879_v48 = vand.u32 2147483648, %v862_v35  ;;  %vm878_vm10 = vcmp.eq.f32.partialorder %v862_v35, 0.0 }
 0x574   : > { %v2097_v36 = vpop.eup %2096 }
 0x575   : > { %v868_v37 = vmul.f32 %v2097_v36, %v861_v32 }
 0x577   : > { %v870_v41 = vsel %vm869_vm4, %v861_v32, %v868_v37 }
 0x578   : > { %v873_v42 = vsel %vm871_vm5, %v872_v39, %v870_v41  ;;  %v2099_v43 = vpop.eup %2098 }
 0x579   : > { %v888_v44 = vadd.f32 %v873_v42, %v864_v40  ;;  %v875_v46 = vmul.f32 %v2099_v43, %v862_v35 }
 0x57b   : > { %v891_v47 = vmul.f32 0.5, %v888_v44  ;;  %v877_v51 = vsel %vm876_vm7, %v862_v35, %v875_v46 }
 0x57c   : > { %v880_v52 = vsel %vm878_vm10, %v879_v48, %v877_v51 }
 0x57d   : > { %v897_v53 = vsel %vm894_vm6, %v855_v45, %v891_v47  ;;  %v889_v54 = vadd.f32 %v880_v52, %v865_v50 }
 0x57e   : > { %v900_v55 = vmin.f32 %v2669_v59, %v897_v53 }
 0x57f   : > { %v892_v57 = vmul.f32 0.5, %v889_v54 }
 0x580   : > { %v2707_v58 = vsel %vm66_vm0, 1e+09, %v900_v55 }
 0x581   : > { %918 = vrot.lane.b32.xlu0 %v2707_v58, %s2250_s19  ;;  %v898_v16 = vsel %vm895_vm11, %v856_v56, %v892_v57  ;;  %v906_v19 = vrot.slane %v2707_v58, 7  ;;  %v912_v15 = vrot.slane %v2707_v58, 1 }
 0x582   : > { %v901_v14 = vmin.f32 %v2679_v60, %v898_v16 }
 0x583   : > { %v911_v2 = vsel %vm97_vm8, %v2418_v21, %v906_v19 }
 0x584   : > { %v2717_v59 = vsel %vm66_vm0, 1e+09, %v901_v14 }
 0x585   : > { %924 = vrot.lane.b32.xlu0 %v2707_v58, %s2249_s18  ;;  %920 = vrot.lane.b32.xlu1 %v2717_v59, %s2250_s19  ;;  %v913_v18 = vrot.slane %v2717_v59, 1  ;;  %v907_v62 = vrot.slane %v2717_v59, 7 }
 0x587   : > { %v916_v61 = vsel %vm104_vm9, %v912_v15, %v913_v18  ;;  %v910_v22 = vsel %vm97_vm8, %v906_v19, %v907_v62  ;;  %v915_v23 = vsel %vm104_vm9, %v913_v18, %v2423_v24 }
 0x588   : > { %v930_v12 = vmin.f32 %v911_v2, %v916_v61  ;;  %v931_v27 = vmin.f32 %v910_v22, %v915_v23 }
 0x589   : > { %926 = vrot.lane.b32.xlu1 %v2717_v59, %s2249_s18 }
 0x5f3   : > { %v919_v60 = vpop.permute.xlu0 %918 }
 0x5f7   : > { %v925_v63 = vpop.permute.xlu0 %924  ;;  %v921_v17 = vpop.permute.xlu1 %920 }
 0x5f8   : > { %v933_v11 = vmin.f32 %v919_v60, %v925_v63 }
 0x5fa   : > { %v936_v20 = vsub.f32 %v930_v12, %v933_v11  ;;  %v942_v37 = vmin.f32 %v930_v12, %v933_v11  ;;  %v954_v39 = vadd.f32 %v933_v11, %v930_v12 }
 0x5fb   : > { %v927_v26 = vpop.permute.xlu1 %926 }
 0x5fc   : > { %v939_v25 = vmul.f32 %v936_v20, %v936_v20  ;;  %v934_v28 = vmin.f32 %v921_v17, %v927_v26  ;;  %v945_v44 = vadd.f32 %v942_v37, %v2313_v0 }
 0x5fe   : > { %v948_v29 = vsub.f32 %v2331_v7, %v939_v25  ;;  %v937_v30 = vsub.f32 %v931_v27, %v934_v28  ;;  %vm984_vm14 = vcmp.ge.f32.partialorder %v939_v25, %v2319_v3  ;;  %v943_v48 = vmin.f32 %v931_v27, %v934_v28 }
 0x5ff   : > { %v955_v49 = vadd.f32 %v934_v28, %v931_v27 }
 0x600   : > { %v951_v31 = vmax.f32 %v948_v29, 0.0  ;;  %v940_v32 = vmul.f32 %v937_v30, %v937_v30  ;;  %v946_v55 = vadd.f32 %v943_v48, %v2315_v1 }
 0x602   : > { %2100 = vrsqrt.f32 %v951_v31  ;;  %v949_v33 = vsub.f32 %v2335_v8, %v940_v32  ;;  %vm959_vm12 = vcmp.eq.f32.partialorder %v951_v31, inf  ;;  %v962_v38 = vand.u32 2147483648, %v951_v31 }
 0x603   : > { %vm961_vm13 = vcmp.eq.f32.partialorder %v951_v31, 0.0  ;;  %vm985_vm2 = vcmp.ge.f32.partialorder %v940_v32, %v2323_v4 }
 0x604   : > { %v952_v34 = vmax.f32 %v949_v33, 0.0 }
 0x606   : > { %2102 = vrsqrt.f32 %v952_v34  ;;  %vm966_vm15 = vcmp.eq.f32.partialorder %v952_v34, inf  ;;  %v969_v47 = vand.u32 2147483648, %v952_v34  ;;  %vm968_vm1 = vcmp.eq.f32.partialorder %v952_v34, 0.0 }
 0x60c   : > { %v2101_v35 = vpop.eup %2100 }
 0x60d   : > { %v958_v36 = vmul.f32 %v2101_v35, %v951_v31 }
 0x60f   : > { %v960_v40 = vsel %vm959_vm12, %v951_v31, %v958_v36 }
 0x610   : > { %v963_v41 = vsel %vm961_vm13, %v962_v38, %v960_v40  ;;  %v2103_v42 = vpop.eup %2102 }
 0x611   : > { %v978_v43 = vadd.f32 %v963_v41, %v954_v39  ;;  %v965_v45 = vmul.f32 %v2103_v42, %v952_v34 }
 0x613   : > { %v981_v46 = vmul.f32 0.5, %v978_v43  ;;  %v967_v50 = vsel %vm966_vm15, %v952_v34, %v965_v45 }
 0x614   : > { %v970_v51 = vsel %vm968_vm1, %v969_v47, %v967_v50 }
 0x615   : > { %v987_v52 = vsel %vm984_vm14, %v945_v44, %v981_v46  ;;  %v979_v53 = vadd.f32 %v970_v51, %v955_v49 }
 0x616   : > { %v990_v54 = vmin.f32 %v2707_v58, %v987_v52 }
 0x617   : > { %v982_v56 = vmul.f32 0.5, %v979_v53 }
 0x618   : > { %v2745_v57 = vsel %vm66_vm0, 1e+09, %v990_v54 }
 0x619   : > { %1008 = vrot.lane.b32.xlu0 %v2745_v57, %s2250_s19  ;;  %v988_v16 = vsel %vm985_vm2, %v946_v55, %v982_v56  ;;  %v996_v19 = vrot.slane %v2745_v57, 7  ;;  %v1002_v15 = vrot.slane %v2745_v57, 1 }
 0x61a   : > { %v991_v14 = vmin.f32 %v2717_v59, %v988_v16 }
 0x61b   : > { %v1001_v63 = vsel %vm97_vm8, %v2418_v21, %v996_v19 }
 0x61c   : > { %v2755_v58 = vsel %vm66_vm0, 1e+09, %v991_v14 }
 0x61d   : > { %1014 = vrot.lane.b32.xlu0 %v2745_v57, %s2249_s18  ;;  %1010 = vrot.lane.b32.xlu1 %v2755_v58, %s2250_s19  ;;  %v1003_v18 = vrot.slane %v2755_v58, 1  ;;  %v997_v61 = vrot.slane %v2755_v58, 7 }
 0x61f   : > { %v1006_v60 = vsel %vm104_vm9, %v1002_v15, %v1003_v18  ;;  %v1000_v20 = vsel %vm97_vm8, %v996_v19, %v997_v61  ;;  %v1005_v22 = vsel %vm104_vm9, %v1003_v18, %v2423_v24 }
 0x620   : > { %v1020_v2 = vmin.f32 %v1001_v63, %v1006_v60  ;;  %v1021_v26 = vmin.f32 %v1000_v20, %v1005_v22 }
 0x621   : > { %1016 = vrot.lane.b32.xlu1 %v2755_v58, %s2249_s18 }
 0x68b   : > { %v1009_v59 = vpop.permute.xlu0 %1008 }
 0x68f   : > { %v1015_v62 = vpop.permute.xlu0 %1014  ;;  %v1011_v11 = vpop.permute.xlu1 %1010 }
 0x690   : > { %v1023_v12 = vmin.f32 %v1009_v59, %v1015_v62 }
 0x692   : > { %v1026_v17 = vsub.f32 %v1020_v2, %v1023_v12  ;;  %v1032_v36 = vmin.f32 %v1020_v2, %v1023_v12  ;;  %v1044_v38 = vadd.f32 %v1023_v12, %v1020_v2 }
 0x693   : > { %v1017_v25 = vpop.permute.xlu1 %1016 }
 0x694   : > { %v1029_v23 = vmul.f32 %v1026_v17, %v1026_v17  ;;  %v1024_v27 = vmin.f32 %v1011_v11, %v1017_v25  ;;  %v1035_v43 = vadd.f32 %v1032_v36, %v2313_v0 }
 0x696   : > { %v1038_v28 = vsub.f32 %v2331_v7, %v1029_v23  ;;  %v1027_v29 = vsub.f32 %v1021_v26, %v1024_v27  ;;  %vm1074_vm5 = vcmp.ge.f32.partialorder %v1029_v23, %v2319_v3  ;;  %v1033_v47 = vmin.f32 %v1021_v26, %v1024_v27 }
 0x697   : > { %v1045_v48 = vadd.f32 %v1024_v27, %v1021_v26 }
 0x698   : > { %v1041_v30 = vmax.f32 %v1038_v28, 0.0  ;;  %v1030_v31 = vmul.f32 %v1027_v29, %v1027_v29  ;;  %v1036_v54 = vadd.f32 %v1033_v47, %v2315_v1 }
 0x69a   : > { %2104 = vrsqrt.f32 %v1041_v30  ;;  %v1039_v32 = vsub.f32 %v2335_v8, %v1030_v31  ;;  %vm1049_vm3 = vcmp.eq.f32.partialorder %v1041_v30, inf  ;;  %v1052_v37 = vand.u32 2147483648, %v1041_v30 }
 0x69b   : > { %vm1051_vm4 = vcmp.eq.f32.partialorder %v1041_v30, 0.0  ;;  %vm1075_vm10 = vcmp.ge.f32.partialorder %v1030_v31, %v2323_v4 }
 0x69c   : > { %v1042_v33 = vmax.f32 %v1039_v32, 0.0 }
 0x69e   : > { %2106 = vrsqrt.f32 %v1042_v33  ;;  %vm1056_vm6 = vcmp.eq.f32.partialorder %v1042_v33, inf  ;;  %v1059_v46 = vand.u32 2147483648, %v1042_v33  ;;  %vm1058_vm7 = vcmp.eq.f32.partialorder %v1042_v33, 0.0 }
 0x6a4   : > { %v2105_v34 = vpop.eup %2104 }
 0x6a5   : > { %v1048_v35 = vmul.f32 %v2105_v34, %v1041_v30 }
 0x6a7   : > { %v1050_v39 = vsel %vm1049_vm3, %v1041_v30, %v1048_v35 }
 0x6a8   : > { %v1053_v40 = vsel %vm1051_vm4, %v1052_v37, %v1050_v39  ;;  %v2107_v41 = vpop.eup %2106 }
 0x6a9   : > { %v1068_v42 = vadd.f32 %v1053_v40, %v1044_v38  ;;  %v1055_v44 = vmul.f32 %v2107_v41, %v1042_v33 }
 0x6ab   : > { %v1071_v45 = vmul.f32 0.5, %v1068_v42  ;;  %v1057_v49 = vsel %vm1056_vm6, %v1042_v33, %v1055_v44 }
 0x6ac   : > { %v1060_v50 = vsel %vm1058_vm7, %v1059_v46, %v1057_v49 }
 0x6ad   : > { %v1077_v51 = vsel %vm1074_vm5, %v1035_v43, %v1071_v45  ;;  %v1069_v52 = vadd.f32 %v1060_v50, %v1045_v48 }
 0x6ae   : > { %v1080_v53 = vmin.f32 %v2745_v57, %v1077_v51 }
 0x6af   : > { %v1072_v55 = vmul.f32 0.5, %v1069_v52 }
 0x6b0   : > { %v2783_v56 = vsel %vm66_vm0, 1e+09, %v1080_v53 }
 0x6b1   : > { %1098 = vrot.lane.b32.xlu0 %v2783_v56, %s2250_s19  ;;  %v1078_v16 = vsel %vm1075_vm10, %v1036_v54, %v1072_v55  ;;  %v1086_v19 = vrot.slane %v2783_v56, 7  ;;  %v1092_v15 = vrot.slane %v2783_v56, 1 }
 0x6b2   : > { %v1081_v14 = vmin.f32 %v2755_v58, %v1078_v16 }
 0x6b3   : > { %v1091_v62 = vsel %vm97_vm8, %v2418_v21, %v1086_v19 }
 0x6b4   : > { %v2793_v57 = vsel %vm66_vm0, 1e+09, %v1081_v14 }
 0x6b5   : > { %1104 = vrot.lane.b32.xlu0 %v2783_v56, %s2249_s18  ;;  %1100 = vrot.lane.b32.xlu1 %v2793_v57, %s2250_s19  ;;  %v1093_v18 = vrot.slane %v2793_v57, 1  ;;  %v1087_v60 = vrot.slane %v2793_v57, 7 }
 0x6b7   : > { %v1096_v59 = vsel %vm104_vm9, %v1092_v15, %v1093_v18  ;;  %v1090_v17 = vsel %vm97_vm8, %v1086_v19, %v1087_v60  ;;  %v1095_v20 = vsel %vm104_vm9, %v1093_v18, %v2423_v24 }
 0x6b8   : > { %v1110_v63 = vmin.f32 %v1091_v62, %v1096_v59  ;;  %v1111_v25 = vmin.f32 %v1090_v17, %v1095_v20 }
 0x6b9   : > { %1106 = vrot.lane.b32.xlu1 %v2793_v57, %s2249_s18 }
 0x723   : > { %v1099_v58 = vpop.permute.xlu0 %1098 }
 0x727   : > { %v1105_v61 = vpop.permute.xlu0 %1104  ;;  %v1101_v12 = vpop.permute.xlu1 %1100 }
 0x728   : > { %v1113_v2 = vmin.f32 %v1099_v58, %v1105_v61 }
 0x72a   : > { %v1116_v11 = vsub.f32 %v1110_v63, %v1113_v2  ;;  %v1122_v35 = vmin.f32 %v1110_v63, %v1113_v2  ;;  %v1134_v37 = vadd.f32 %v1113_v2, %v1110_v63 }
 0x72b   : > { %v1107_v23 = vpop.permute.xlu1 %1106 }
 0x72c   : > { %v1119_v22 = vmul.f32 %v1116_v11, %v1116_v11  ;;  %v1114_v26 = vmin.f32 %v1101_v12, %v1107_v23  ;;  %v1125_v42 = vadd.f32 %v1122_v35, %v2313_v0 }
 0x72e   : > { %v1128_v27 = vsub.f32 %v2331_v7, %v1119_v22  ;;  %v1117_v28 = vsub.f32 %v1111_v25, %v1114_v26  ;;  %vm1164_vm13 = vcmp.ge.f32.partialorder %v1119_v22, %v2319_v3  ;;  %v1123_v46 = vmin.f32 %v1111_v25, %v1114_v26 }
 0x72f   : > { %v1135_v47 = vadd.f32 %v1114_v26, %v1111_v25 }
 0x730   : > { %v1131_v29 = vmax.f32 %v1128_v27, 0.0  ;;  %v1120_v30 = vmul.f32 %v1117_v28, %v1117_v28  ;;  %v1126_v53 = vadd.f32 %v1123_v46, %v2315_v1 }
 0x732   : > { %2108 = vrsqrt.f32 %v1131_v29  ;;  %v1129_v31 = vsub.f32 %v2335_v8, %v1120_v30  ;;  %vm1139_vm11 = vcmp.eq.f32.partialorder %v1131_v29, inf  ;;  %v1142_v36 = vand.u32 2147483648, %v1131_v29 }
 0x733   : > { %vm1141_vm12 = vcmp.eq.f32.partialorder %v1131_v29, 0.0  ;;  %vm1165_vm1 = vcmp.ge.f32.partialorder %v1120_v30, %v2323_v4 }
 0x734   : > { %v1132_v32 = vmax.f32 %v1129_v31, 0.0 }
 0x736   : > { %2110 = vrsqrt.f32 %v1132_v32  ;;  %vm1146_vm14 = vcmp.eq.f32.partialorder %v1132_v32, inf  ;;  %v1149_v45 = vand.u32 2147483648, %v1132_v32  ;;  %vm1148_vm15 = vcmp.eq.f32.partialorder %v1132_v32, 0.0 }
 0x73c   : > { %v2109_v33 = vpop.eup %2108 }
 0x73d   : > { %v1138_v34 = vmul.f32 %v2109_v33, %v1131_v29 }
 0x73f   : > { %v1140_v38 = vsel %vm1139_vm11, %v1131_v29, %v1138_v34 }
 0x740   : > { %v1143_v39 = vsel %vm1141_vm12, %v1142_v36, %v1140_v38  ;;  %v2111_v40 = vpop.eup %2110 }
 0x741   : > { %v1158_v41 = vadd.f32 %v1143_v39, %v1134_v37  ;;  %v1145_v43 = vmul.f32 %v2111_v40, %v1132_v32 }
 0x743   : > { %v1161_v44 = vmul.f32 0.5, %v1158_v41  ;;  %v1147_v48 = vsel %vm1146_vm14, %v1132_v32, %v1145_v43 }
 0x744   : > { %v1150_v49 = vsel %vm1148_vm15, %v1149_v45, %v1147_v48 }
 0x745   : > { %v1167_v50 = vsel %vm1164_vm13, %v1125_v42, %v1161_v44  ;;  %v1159_v51 = vadd.f32 %v1150_v49, %v1135_v47 }
 0x746   : > { %v1170_v52 = vmin.f32 %v2783_v56, %v1167_v50 }
 0x747   : > { %v1162_v54 = vmul.f32 0.5, %v1159_v51 }
 0x748   : > { %v2821_v55 = vsel %vm66_vm0, 1e+09, %v1170_v52 }
 0x749   : > { %1188 = vrot.lane.b32.xlu0 %v2821_v55, %s2250_s19  ;;  %v1168_v16 = vsel %vm1165_vm1, %v1126_v53, %v1162_v54  ;;  %v1176_v19 = vrot.slane %v2821_v55, 7  ;;  %v1182_v15 = vrot.slane %v2821_v55, 1 }
 0x74a   : > { %v1171_v14 = vmin.f32 %v2793_v57, %v1168_v16 }
 0x74b   : > { %v1181_v61 = vsel %vm97_vm8, %v2418_v21, %v1176_v19 }
 0x74c   : > { %v2831_v56 = vsel %vm66_vm0, 1e+09, %v1171_v14 }
 0x74d   : > { %1194 = vrot.lane.b32.xlu0 %v2821_v55, %s2249_s18  ;;  %1190 = vrot.lane.b32.xlu1 %v2831_v56, %s2250_s19  ;;  %v1183_v18 = vrot.slane %v2831_v56, 1  ;;  %v1177_v59 = vrot.slane %v2831_v56, 7 }
 0x74f   : > { %v1186_v58 = vsel %vm104_vm9, %v1182_v15, %v1183_v18  ;;  %v1180_v11 = vsel %vm97_vm8, %v1176_v19, %v1177_v59  ;;  %v1185_v17 = vsel %vm104_vm9, %v1183_v18, %v2423_v24 }
 0x750   : > { %v1200_v62 = vmin.f32 %v1181_v61, %v1186_v58  ;;  %v1201_v23 = vmin.f32 %v1180_v11, %v1185_v17 }
 0x751   : > { %1196 = vrot.lane.b32.xlu1 %v2831_v56, %s2249_s18 }
 0x7bb   : > { %v1189_v57 = vpop.permute.xlu0 %1188 }
 0x7bf   : > { %v1195_v60 = vpop.permute.xlu0 %1194  ;;  %v1191_v2 = vpop.permute.xlu1 %1190 }
 0x7c0   : > { %v1203_v63 = vmin.f32 %v1189_v57, %v1195_v60 }
 0x7c2   : > { %v1206_v12 = vsub.f32 %v1200_v62, %v1203_v63  ;;  %v1212_v34 = vmin.f32 %v1200_v62, %v1203_v63  ;;  %v1224_v36 = vadd.f32 %v1203_v63, %v1200_v62 }
 0x7c3   : > { %v1197_v22 = vpop.permute.xlu1 %1196 }
 0x7c4   : > { %v1209_v20 = vmul.f32 %v1206_v12, %v1206_v12  ;;  %v1204_v25 = vmin.f32 %v1191_v2, %v1197_v22  ;;  %v1215_v41 = vadd.f32 %v1212_v34, %v2313_v0 }
 0x7c6   : > { %v1218_v26 = vsub.f32 %v2331_v7, %v1209_v20  ;;  %v1207_v27 = vsub.f32 %v1201_v23, %v1204_v25  ;;  %vm1254_vm4 = vcmp.ge.f32.partialorder %v1209_v20, %v2319_v3  ;;  %v1213_v45 = vmin.f32 %v1201_v23, %v1204_v25 }
 0x7c7   : > { %v1225_v46 = vadd.f32 %v1204_v25, %v1201_v23 }
 0x7c8   : > { %v1221_v28 = vmax.f32 %v1218_v26, 0.0  ;;  %v1210_v29 = vmul.f32 %v1207_v27, %v1207_v27  ;;  %v1216_v52 = vadd.f32 %v1213_v45, %v2315_v1 }
 0x7ca   : > { %2112 = vrsqrt.f32 %v1221_v28  ;;  %v1219_v30 = vsub.f32 %v2335_v8, %v1210_v29  ;;  %vm1229_vm2 = vcmp.eq.f32.partialorder %v1221_v28, inf  ;;  %v1232_v35 = vand.u32 2147483648, %v1221_v28 }
 0x7cb   : > { %vm1231_vm3 = vcmp.eq.f32.partialorder %v1221_v28, 0.0  ;;  %vm1255_vm7 = vcmp.ge.f32.partialorder %v1210_v29, %v2323_v4 }
 0x7cc   : > { %v1222_v31 = vmax.f32 %v1219_v30, 0.0 }
 0x7ce   : > { %2114 = vrsqrt.f32 %v1222_v31  ;;  %vm1236_vm5 = vcmp.eq.f32.partialorder %v1222_v31, inf  ;;  %v1239_v44 = vand.u32 2147483648, %v1222_v31  ;;  %vm1238_vm6 = vcmp.eq.f32.partialorder %v1222_v31, 0.0 }
 0x7d4   : > { %v2113_v32 = vpop.eup %2112 }
 0x7d5   : > { %v1228_v33 = vmul.f32 %v2113_v32, %v1221_v28 }
 0x7d7   : > { %v1230_v37 = vsel %vm1229_vm2, %v1221_v28, %v1228_v33 }
 0x7d8   : > { %v1233_v38 = vsel %vm1231_vm3, %v1232_v35, %v1230_v37  ;;  %v2115_v39 = vpop.eup %2114 }
 0x7d9   : > { %v1248_v40 = vadd.f32 %v1233_v38, %v1224_v36  ;;  %v1235_v42 = vmul.f32 %v2115_v39, %v1222_v31 }
 0x7db   : > { %v1251_v43 = vmul.f32 0.5, %v1248_v40  ;;  %v1237_v47 = vsel %vm1236_vm5, %v1222_v31, %v1235_v42 }
 0x7dc   : > { %v1240_v48 = vsel %vm1238_vm6, %v1239_v44, %v1237_v47 }
 0x7dd   : > { %v1257_v49 = vsel %vm1254_vm4, %v1215_v41, %v1251_v43  ;;  %v1249_v50 = vadd.f32 %v1240_v48, %v1225_v46 }
 0x7de   : > { %v1260_v51 = vmin.f32 %v2821_v55, %v1257_v49 }
 0x7df   : > { %v1252_v53 = vmul.f32 0.5, %v1249_v50 }
 0x7e0   : > { %v2859_v54 = vsel %vm66_vm0, 1e+09, %v1260_v51 }
 0x7e1   : > { %1278 = vrot.lane.b32.xlu0 %v2859_v54, %s2250_s19  ;;  %v1258_v16 = vsel %vm1255_vm7, %v1216_v52, %v1252_v53  ;;  %v1266_v19 = vrot.slane %v2859_v54, 7  ;;  %v1272_v15 = vrot.slane %v2859_v54, 1 }
 0x7e2   : > { %v1261_v14 = vmin.f32 %v2831_v56, %v1258_v16 }
 0x7e3   : > { %v1271_v60 = vsel %vm97_vm8, %v2418_v21, %v1266_v19 }
 0x7e4   : > { %v2869_v55 = vsel %vm66_vm0, 1e+09, %v1261_v14 }
 0x7e5   : > { %1284 = vrot.lane.b32.xlu0 %v2859_v54, %s2249_s18  ;;  %1280 = vrot.lane.b32.xlu1 %v2869_v55, %s2250_s19  ;;  %v1273_v18 = vrot.slane %v2869_v55, 1  ;;  %v1267_v58 = vrot.slane %v2869_v55, 7 }
 0x7e7   : > { %v1276_v57 = vsel %vm104_vm9, %v1272_v15, %v1273_v18  ;;  %v1270_v12 = vsel %vm97_vm8, %v1266_v19, %v1267_v58  ;;  %v1275_v11 = vsel %vm104_vm9, %v1273_v18, %v2423_v24 }
 0x7e8   : > { %v1290_v61 = vmin.f32 %v1271_v60, %v1276_v57  ;;  %v1291_v22 = vmin.f32 %v1270_v12, %v1275_v11 }
 0x7e9   : > { %1286 = vrot.lane.b32.xlu1 %v2869_v55, %s2249_s18 }
 0x853   : > { %v1279_v56 = vpop.permute.xlu0 %1278 }
 0x857   : > { %v1285_v59 = vpop.permute.xlu0 %1284  ;;  %v1281_v63 = vpop.permute.xlu1 %1280 }
 0x858   : > { %v1293_v62 = vmin.f32 %v1279_v56, %v1285_v59 }
 0x85a   : > { %v1296_v2 = vsub.f32 %v1290_v61, %v1293_v62  ;;  %v1302_v33 = vmin.f32 %v1290_v61, %v1293_v62  ;;  %v1314_v35 = vadd.f32 %v1293_v62, %v1290_v61 }
 0x85b   : > { %v1287_v20 = vpop.permute.xlu1 %1286 }
 0x85c   : > { %v1299_v17 = vmul.f32 %v1296_v2, %v1296_v2  ;;  %v1294_v23 = vmin.f32 %v1281_v63, %v1287_v20  ;;  %v1305_v40 = vadd.f32 %v1302_v33, %v2313_v0 }
 0x85e   : > { %v1308_v25 = vsub.f32 %v2331_v7, %v1299_v17  ;;  %v1297_v26 = vsub.f32 %v1291_v22, %v1294_v23  ;;  %vm1344_vm12 = vcmp.ge.f32.partialorder %v1299_v17, %v2319_v3  ;;  %v1303_v44 = vmin.f32 %v1291_v22, %v1294_v23 }
 0x85f   : > { %v1315_v45 = vadd.f32 %v1294_v23, %v1291_v22 }
 0x860   : > { %v1311_v27 = vmax.f32 %v1308_v25, 0.0  ;;  %v1300_v28 = vmul.f32 %v1297_v26, %v1297_v26  ;;  %v1306_v51 = vadd.f32 %v1303_v44, %v2315_v1 }
 0x862   : > { %2116 = vrsqrt.f32 %v1311_v27  ;;  %v1309_v29 = vsub.f32 %v2335_v8, %v1300_v28  ;;  %vm1319_vm10 = vcmp.eq.f32.partialorder %v1311_v27, inf  ;;  %v1322_v34 = vand.u32 2147483648, %v1311_v27 }
 0x863   : > { %vm1321_vm11 = vcmp.eq.f32.partialorder %v1311_v27, 0.0  ;;  %vm1345_vm15 = vcmp.ge.f32.partialorder %v1300_v28, %v2323_v4 }
 0x864   : > { %v1312_v30 = vmax.f32 %v1309_v29, 0.0 }
 0x866   : > { %2118 = vrsqrt.f32 %v1312_v30  ;;  %vm1326_vm13 = vcmp.eq.f32.partialorder %v1312_v30, inf  ;;  %v1329_v43 = vand.u32 2147483648, %v1312_v30  ;;  %vm1328_vm14 = vcmp.eq.f32.partialorder %v1312_v30, 0.0 }
 0x86c   : > { %v2117_v31 = vpop.eup %2116 }
 0x86d   : > { %v1318_v32 = vmul.f32 %v2117_v31, %v1311_v27 }
 0x86f   : > { %v1320_v36 = vsel %vm1319_vm10, %v1311_v27, %v1318_v32 }
 0x870   : > { %v1323_v37 = vsel %vm1321_vm11, %v1322_v34, %v1320_v36  ;;  %v2119_v38 = vpop.eup %2118 }
 0x871   : > { %v1338_v39 = vadd.f32 %v1323_v37, %v1314_v35  ;;  %v1325_v41 = vmul.f32 %v2119_v38, %v1312_v30 }
 0x873   : > { %v1341_v42 = vmul.f32 0.5, %v1338_v39  ;;  %v1327_v46 = vsel %vm1326_vm13, %v1312_v30, %v1325_v41 }
 0x874   : > { %v1330_v47 = vsel %vm1328_vm14, %v1329_v43, %v1327_v46 }
 0x875   : > { %v1347_v48 = vsel %vm1344_vm12, %v1305_v40, %v1341_v42  ;;  %v1339_v49 = vadd.f32 %v1330_v47, %v1315_v45 }
 0x876   : > { %v1350_v50 = vmin.f32 %v2859_v54, %v1347_v48 }
 0x877   : > { %v1342_v52 = vmul.f32 0.5, %v1339_v49 }
 0x878   : > { %v2897_v53 = vsel %vm66_vm0, 1e+09, %v1350_v50 }
 0x879   : > { %1368 = vrot.lane.b32.xlu0 %v2897_v53, %s2250_s19  ;;  %v1348_v16 = vsel %vm1345_vm15, %v1306_v51, %v1342_v52  ;;  %v1356_v19 = vrot.slane %v2897_v53, 7  ;;  %v1362_v15 = vrot.slane %v2897_v53, 1 }
 0x87a   : > { %v1351_v14 = vmin.f32 %v2869_v55, %v1348_v16 }
 0x87b   : > { %v1361_v59 = vsel %vm97_vm8, %v2418_v21, %v1356_v19 }
 0x87c   : > { %v2907_v54 = vsel %vm66_vm0, 1e+09, %v1351_v14 }
 0x87d   : > { %1374 = vrot.lane.b32.xlu0 %v2897_v53, %s2249_s18  ;;  %1370 = vrot.lane.b32.xlu1 %v2907_v54, %s2250_s19  ;;  %v1363_v18 = vrot.slane %v2907_v54, 1  ;;  %v1357_v57 = vrot.slane %v2907_v54, 7 }
 0x87f   : > { %v1366_v56 = vsel %vm104_vm9, %v1362_v15, %v1363_v18  ;;  %v1360_v2 = vsel %vm97_vm8, %v1356_v19, %v1357_v57  ;;  %v1365_v12 = vsel %vm104_vm9, %v1363_v18, %v2423_v24 }
 0x880   : > { %v1380_v60 = vmin.f32 %v1361_v59, %v1366_v56  ;;  %v1381_v20 = vmin.f32 %v1360_v2, %v1365_v12 }
 0x881   : > { %1376 = vrot.lane.b32.xlu1 %v2907_v54, %s2249_s18 }
 0x8eb   : > { %v1369_v55 = vpop.permute.xlu0 %1368 }
 0x8ef   : > { %v1375_v58 = vpop.permute.xlu0 %1374  ;;  %v1371_v62 = vpop.permute.xlu1 %1370 }
 0x8f0   : > { %v1383_v61 = vmin.f32 %v1369_v55, %v1375_v58 }
 0x8f2   : > { %v1386_v63 = vsub.f32 %v1380_v60, %v1383_v61  ;;  %v1392_v32 = vmin.f32 %v1380_v60, %v1383_v61  ;;  %v1404_v34 = vadd.f32 %v1383_v61, %v1380_v60 }
 0x8f3   : > { %v1377_v17 = vpop.permute.xlu1 %1376 }
 0x8f4   : > { %v1389_v11 = vmul.f32 %v1386_v63, %v1386_v63  ;;  %v1384_v22 = vmin.f32 %v1371_v62, %v1377_v17  ;;  %v1395_v39 = vadd.f32 %v1392_v32, %v2313_v0 }
 0x8f6   : > { %v1398_v23 = vsub.f32 %v2331_v7, %v1389_v11  ;;  %v1387_v25 = vsub.f32 %v1381_v20, %v1384_v22  ;;  %vm1434_vm3 = vcmp.ge.f32.partialorder %v1389_v11, %v2319_v3  ;;  %v1393_v43 = vmin.f32 %v1381_v20, %v1384_v22 }
 0x8f7   : > { %v1405_v44 = vadd.f32 %v1384_v22, %v1381_v20 }
 0x8f8   : > { %v1401_v26 = vmax.f32 %v1398_v23, 0.0  ;;  %v1390_v27 = vmul.f32 %v1387_v25, %v1387_v25  ;;  %v1396_v50 = vadd.f32 %v1393_v43, %v2315_v1 }
 0x8fa   : > { %2120 = vrsqrt.f32 %v1401_v26  ;;  %v1399_v28 = vsub.f32 %v2335_v8, %v1390_v27  ;;  %vm1409_vm1 = vcmp.eq.f32.partialorder %v1401_v26, inf  ;;  %v1412_v33 = vand.u32 2147483648, %v1401_v26 }
 0x8fb   : > { %vm1411_vm2 = vcmp.eq.f32.partialorder %v1401_v26, 0.0  ;;  %vm1435_vm6 = vcmp.ge.f32.partialorder %v1390_v27, %v2323_v4 }
 0x8fc   : > { %v1402_v29 = vmax.f32 %v1399_v28, 0.0 }
 0x8fe   : > { %2122 = vrsqrt.f32 %v1402_v29  ;;  %vm1416_vm4 = vcmp.eq.f32.partialorder %v1402_v29, inf  ;;  %v1419_v42 = vand.u32 2147483648, %v1402_v29  ;;  %vm1418_vm5 = vcmp.eq.f32.partialorder %v1402_v29, 0.0 }
 0x904   : > { %v2121_v30 = vpop.eup %2120 }
 0x905   : > { %v1408_v31 = vmul.f32 %v2121_v30, %v1401_v26 }
 0x907   : > { %v1410_v35 = vsel %vm1409_vm1, %v1401_v26, %v1408_v31 }
 0x908   : > { %v1413_v36 = vsel %vm1411_vm2, %v1412_v33, %v1410_v35  ;;  %v2123_v37 = vpop.eup %2122 }
 0x909   : > { %v1428_v38 = vadd.f32 %v1413_v36, %v1404_v34  ;;  %v1415_v40 = vmul.f32 %v2123_v37, %v1402_v29 }
 0x90b   : > { %v1431_v41 = vmul.f32 0.5, %v1428_v38  ;;  %v1417_v45 = vsel %vm1416_vm4, %v1402_v29, %v1415_v40 }
 0x90c   : > { %v1420_v47 = vsel %vm1418_vm5, %v1419_v42, %v1417_v45 }
 0x90d   : > { %v1437_v46 = vsel %vm1434_vm3, %v1395_v39, %v1431_v41  ;;  %v1429_v48 = vadd.f32 %v1420_v47, %v1405_v44 }
 0x90e   : > { %v1440_v49 = vmin.f32 %v2897_v53, %v1437_v46 }
 0x90f   : > { %v1432_v51 = vmul.f32 0.5, %v1429_v48 }
 0x910   : > { %v2935_v52 = vsel %vm66_vm0, 1e+09, %v1440_v49 }
 0x911   : > { %1458 = vrot.lane.b32.xlu0 %v2935_v52, %s2250_s19  ;;  %v1438_v16 = vsel %vm1435_vm6, %v1396_v50, %v1432_v51  ;;  %v1446_v15 = vrot.slane %v2935_v52, 7 }
 0x912   : > { %v1441_v14 = vmin.f32 %v2907_v54, %v1438_v16  ;;  %v1452_v54 = vrot.slane %v2935_v52, 1 }
 0x913   : > { %v1451_v58 = vsel %vm97_vm8, %v2418_v21, %v1446_v15 }
 0x914   : > { %v2945_v53 = vsel %vm66_vm0, 1e+09, %v1441_v14 }
 0x915   : > { %1464 = vrot.lane.b32.xlu0 %v2935_v52, %s2249_s18  ;;  %1460 = vrot.lane.b32.xlu1 %v2945_v53, %s2250_s19  ;;  %v1453_v18 = vrot.slane %v2945_v53, 1  ;;  %v1447_v56 = vrot.slane %v2945_v53, 7 }
 0x917   : > { %v1456_v55 = vsel %vm104_vm9, %v1452_v54, %v1453_v18  ;;  %v1450_v63 = vsel %vm97_vm8, %v1446_v15, %v1447_v56  ;;  %v1455_v2 = vsel %vm104_vm9, %v1453_v18, %v2423_v24 }
 0x918   : > { %v1470_v59 = vmin.f32 %v1451_v58, %v1456_v55  ;;  %v1471_v17 = vmin.f32 %v1450_v63, %v1455_v2 }
 0x919   : > { %1466 = vrot.lane.b32.xlu1 %v2945_v53, %s2249_s18 }
 0x983   : > { %v1459_v19 = vpop.permute.xlu0 %1458 }
 0x987   : > { %v1465_v57 = vpop.permute.xlu0 %1464  ;;  %v1461_v61 = vpop.permute.xlu1 %1460 }
 0x988   : > { %v1473_v60 = vmin.f32 %v1459_v19, %v1465_v57 }
 0x98a   : > { %v1476_v62 = vsub.f32 %v1470_v59, %v1473_v60  ;;  %v1482_v30 = vmin.f32 %v1470_v59, %v1473_v60  ;;  %v1494_v24 = vadd.f32 %v1473_v60, %v1470_v59 }
 0x98b   : > { %v1467_v11 = vpop.permute.xlu1 %1466 }
 0x98c   : > { %v1479_v12 = vmul.f32 %v1476_v62, %v1476_v62  ;;  %v1474_v20 = vmin.f32 %v1461_v61, %v1467_v11  ;;  %v1485_v36 = vadd.f32 %v1482_v30, %v2313_v0 }
 0x98e   : > { %v1488_v22 = vsub.f32 %v2331_v7, %v1479_v12  ;;  %v1477_v23 = vsub.f32 %v1471_v17, %v1474_v20  ;;  %vm1524_vm7 = vcmp.ge.f32.partialorder %v1479_v12, %v2319_v3  ;;  %v1483_v40 = vmin.f32 %v1471_v17, %v1474_v20 }
 0x98f   : > { %v1495_v41 = vadd.f32 %v1474_v20, %v1471_v17 }
 0x990   : > { %v1491_v25 = vmax.f32 %v1488_v22, 0.0  ;;  %v1480_v21 = vmul.f32 %v1477_v23, %v1477_v23  ;;  %v1486_v47 = vadd.f32 %v1483_v40, %v2315_v1 }
 0x992   : > { %2124 = vrsqrt.f32 %v1491_v25  ;;  %v1489_v26 = vsub.f32 %v2335_v8, %v1480_v21  ;;  %vm1499_vm8 = vcmp.eq.f32.partialorder %v1491_v25, inf  ;;  %v1502_v31 = vand.u32 2147483648, %v1491_v25 }
 0x993   : > { %vm1501_vm9 = vcmp.eq.f32.partialorder %v1491_v25, 0.0  ;;  %vm1525_vm12 = vcmp.ge.f32.partialorder %v1480_v21, %v2323_v4 }
 0x994   : > { %v1492_v27 = vmax.f32 %v1489_v26, 0.0 }
 0x996   : > { %2126 = vrsqrt.f32 %v1492_v27  ;;  %vm1506_vm10 = vcmp.eq.f32.partialorder %v1492_v27, inf  ;;  %v1509_v39 = vand.u32 2147483648, %v1492_v27  ;;  %vm1508_vm11 = vcmp.eq.f32.partialorder %v1492_v27, 0.0 }
 0x99c   : > { %v2125_v28 = vpop.eup %2124 }
 0x99d   : > { %v1498_v29 = vmul.f32 %v2125_v28, %v1491_v25 }
 0x99f   : > { %v1500_v32 = vsel %vm1499_vm8, %v1491_v25, %v1498_v29 }
 0x9a0   : > { %v1503_v33 = vsel %vm1501_vm9, %v1502_v31, %v1500_v32  ;;  %v2127_v34 = vpop.eup %2126 }
 0x9a1   : > { %v1518_v35 = vadd.f32 %v1503_v33, %v1494_v24  ;;  %v1505_v37 = vmul.f32 %v2127_v34, %v1492_v27 }
 0x9a3   : > { %v1521_v38 = vmul.f32 0.5, %v1518_v35  ;;  %v1507_v42 = vsel %vm1506_vm10, %v1492_v27, %v1505_v37 }
 0x9a4   : > { %v1510_v43 = vsel %vm1508_vm11, %v1509_v39, %v1507_v42 }
 0x9a5   : > { %v1527_v44 = vsel %vm1524_vm7, %v1485_v36, %v1521_v38  ;;  %v1519_v45 = vadd.f32 %v1510_v43, %v1495_v41 }
 0x9a6   : > { %v1530_v46 = vmin.f32 %v2935_v52, %v1527_v44 }
 0x9a7   : > { %v1522_v48 = vmul.f32 0.5, %v1519_v45 }
 0x9a8   : > { %v2974_v14 = vsel %vm66_vm0, 1e+09, %v1530_v46  }
 0x9a9   : > { %v3167_v49 = vmov %v2974_v14  ;;  %v1528_v50 = vsel %vm1525_vm12, %v1486_v47, %v1522_v48 }
 0x9aa   : > { %v1531_v51 = vmin.f32 %v2945_v53, %v1528_v50  ;;  %v1536_v16 = vsub.f32 %v3167_v49, %v2935_v52 }
 0x9ac   : > { %v2981_v15 = vsel %vm66_vm0, 1e+09, %v1531_v51   ;;  %v1539_v54 = vand.u32 2147483647, %v1536_v16  ;;  %v2986_v16 = vmov 1e+09  }
 0x9ad   : > { %v3168_v18 = vmov %v2981_v15 }
 0x9ae   : > { %v1537_v19 = vsub.f32 %v3168_v18, %v2945_v53  ;;  %v3169_v15 = vmov %v3168_v18 }
 0x9b0   : > { %v1540_v55 = vand.u32 2147483647, %v1537_v19 }
 0x9b2   : > { %v1542_v56 = vmax.f32.f32 %v1539_v54, %v1540_v55 }
 0x9b4   : > { %v1543_v57 = vmax.f32 %v1542_v56, 0.0 }
 0x9b6   : > { %1544 = vmax.xlane.f32.xlu0 %v1543_v57 }
 0xa43   : > { %v1545_v14 = vpop.xlane.xlu0 %1544 }
 0xa44   : > { %v1546_v58 = vrot.slane %v1545_v14, 4 }
 0xa46   : > { %v1547_v59 = vmax.f32 %v1545_v14, %v1546_v58  ;;  %v3170_v14 = vmov %v3167_v49 }
 0xa48   : > { %v1548_v60 = vrot.slane %v1547_v59, 2 }
 0xa4a   : > { %v1549_v61 = vmax.f32 %v1547_v59, %v1548_v60 }
 0xa4c   : > { %v1550_v62 = vrot.slane %v1549_v61, 1 }
 0xa4e   : > { %v1551_v52 = vmax.f32 %v1549_v61, %v1550_v62 }
 0xa50   : > { %2010 = vpush %v1551_v52 }
 0xa81   : > { %s2011_s20 = spop %2010 }
 0xa82   : > { %p89_p12 = scmp.gt.f32.partialorder %s2011_s20, 1e-06 }
 0xa84   : > { %p90_p13 = pnand %p89_p12, %p88_p11 }
 0xa85   :  { %v2999_v53 = vld [vmem:[%s3164_s3] sm:$0x1] (%p90_p13)  ;;  %1554 = vst [vmem:[#allocation7] sm:$0xff] (%p90_p13), %v3167_v49  ;;  %1555 = vst [vmem:[#allocation7 + $0x8] sm:$0xff] (%p90_p13), %v3168_v18  ;;  %v3009_v11 = vsub.s32 (%p90_p13), 0, %v2325_v5  ;;  %v1565_v4 = vadd.s32 (%p90_p13), 24, %v2325_v5 }
 0xa86   :  { %93 = sbr.rel (!%p90_p13) target bundleno = 44 (0x2c), region = 59  ;;  %1556 = vst [vmem:[#allocation7 + $0x10] sm:$0xff] (%p90_p13), %v2248_v13  ;;  %v1562_v63 = vfloor.f32 (%p90_p13), %v2999_v53  ;;  %v1561_v2 = vceil.f32 (%p90_p13), %v2999_v53  ;;  %v2252_v6 = vmov (%p90_p13), 0.0   ;;  %v1566_v15 = vadd.s32 (%p90_p13), 32, %v2325_v5  ;;  %s2254_s3 = smov (%p90_p13), [#allocation7]  }
 0xa87   :  { %1746 = vmatprep.mubr.f32.mxu0 (%p90_p13), %v2252_v6  ;;  %1752 = vmatprep.mubr.f32.mxu1 (%p90_p13), %v2252_v6  ;;  %v1567_v17 = vadd.s32 (%p90_p13), 40, %v2325_v5  ;;  %v2253_v20 = vmov (%p90_p13), 1.0|1.0   ;;  %v1568_v22 = vadd.s32 (%p90_p13), 48, %v2325_v5  ;;  %v1569_v23 = vadd.s32 (%p90_p13), 56, %v2325_v5  ;;  %s1847_s23 = sshll.u32 (%p90_p13), %s2254_s3, 4  ;;  %s1848_s23 = int_to_ptr.vmem [resolvable:$true] %s1847_s23 }
 0xa88   :  { %v2014_v12 = vtrunc.f32 (%p90_p13), %v1562_v63  ;;  %v2012_v0 = vtrunc.f32 (%p90_p13), %v1561_v2  ;;  %v1570_v25 = vadd.s32 (%p90_p13), 64, %v2325_v5  ;;  %v1571_v21 = vadd.s32 (%p90_p13), 72, %v2325_v5  ;;  %s2160_s24 = scalar_lea.vmem (%p90_p13), %s1848_s23, 384  ;;  %p2165_p1 = scmp.lt.s32.totalorder (%p90_p13), %s1848_s23, %s1848_s23 }
 0xa89   :  { %v1572_v26 = vadd.s32 (%p90_p13), 80, %v2325_v5  ;;  %v1573_v27 = vadd.s32 (%p90_p13), 88, %v2325_v5  ;;  %v1574_v28 = vadd.s32 (%p90_p13), 96, %v2325_v5  ;;  %v1575_v29 = vadd.s32 (%p90_p13), 104, %v2325_v5  ;;  %p2161_p0 = scmp.ne.s32.totalorder (%p90_p13), %s1848_s23, %s2160_s24  ;;  %p2166_p2 = scmp.lt.s32.totalorder (%p90_p13), %s2160_s24, %s2160_s24 }
 0xa8a   :  { %v2015_v1 = vcvt.f32.s32 (%p90_p13), %v2014_v12  ;;  %v2013_v3 = vcvt.f32.s32 (%p90_p13), %v2012_v0  ;;  %v1576_v30 = vadd.s32 (%p90_p13), 112, %v2325_v5  ;;  %v1577_v31 = vadd.s32 (%p90_p13), 120, %v2325_v5 }
 0xa8b   :  { %p2167_p3 = por (%p90_p13), %p2166_p2, %p2165_p1 }
 0xa8c   :  { %v3017_v7 = vrot.slane (%p90_p13), %v2015_v1, %v3009_v11  ;;  %v3020_v8 = vrot.slane (%p90_p13), %v2013_v3, %v3009_v11 }
 0xa8d   :  { %p2168_p4 = pnand %p2167_p3, %p2161_p0 }
 0xa8e   :  { %vm1587_vm0 = vcmp.eq.s32.totalorder %v2325_v5, %v3017_v7  ;;  %vm1589_vm13 = vcmp.eq.s32.totalorder %v2338_v9, %v3017_v7  ;;  %vm1586_vm14 = vcmp.eq.s32.totalorder %v2325_v5, %v3020_v8  ;;  %vm1588_vm15 = vcmp.eq.s32.totalorder %v2338_v9, %v3020_v8 }
 0xa8f   :  { %vm1962_vm1 = vmpackc.low %vm1589_vm13, %vm1587_vm0  ;;  %vm1591_vm2 = vcmp.eq.s32.totalorder %v2341_v10, %v3017_v7  ;;  %vm1593_vm3 = vcmp.eq.s32.totalorder %v1565_v4, %v3017_v7  ;;  %vm1590_vm4 = vcmp.eq.s32.totalorder %v2341_v10, %v3020_v8  ;;  %vm1592_vm5 = vcmp.eq.s32.totalorder %v1565_v4, %v3020_v8 }
 0xa90   :  { %1963 = vmatprep.subr.msk.bf16.mxu0 %vm1962_vm1, %v2253_v20  ;;  %1994 = vmatprep.subr.msk.bf16.mxu1 %vm1962_vm1, %v2253_v20  ;;  %vm1964_vm6 = vmpackc.low %vm1588_vm15, %vm1586_vm14  ;;  %vm1595_vm8 = vcmp.eq.s32.totalorder %v1566_v15, %v3017_v7  ;;  %vm1597_vm9 = vcmp.eq.s32.totalorder %v1567_v17, %v3017_v7  ;;  %vm1594_vm12 = vcmp.eq.s32.totalorder %v1566_v15, %v3020_v8 }
 0xa91   :  { %1965 = vmatpush1.bf16.msk.msra.mxu0 %vm1964_vm6, %v2253_v20  ;;  %2002 = vmatpush1.bf16.msk.msra.mxu1 %vm1964_vm6, %v2253_v20  ;;  %vm1966_vm7 = vmpackc.low %vm1593_vm3, %vm1591_vm2  ;;  %vm1596_vm0 = vcmp.eq.s32.totalorder %v1567_v17, %v3020_v8  ;;  %vm1599_vm13 = vcmp.eq.s32.totalorder %v1568_v22, %v3017_v7  ;;  %vm1601_vm14 = vcmp.eq.s32.totalorder %v1569_v23, %v3017_v7 }
 0xa92   :  { %1967 = vmatprep.subr.msk.bf16.mxu0 %vm1966_vm7, %v2253_v20  ;;  %1995 = vmatprep.subr.msk.bf16.mxu1 %vm1966_vm7, %v2253_v20  ;;  %vm1968_vm10 = vmpackc.low %vm1592_vm5, %vm1590_vm4  ;;  %vm1598_vm2 = vcmp.eq.s32.totalorder %v1568_v22, %v3020_v8  ;;  %vm1600_vm3 = vcmp.eq.s32.totalorder %v1569_v23, %v3020_v8  ;;  %vm1603_vm4 = vcmp.eq.s32.totalorder %v1570_v25, %v3017_v7 }
 0xa93   :  { %vm1970_vm11 = vmpackc.low %vm1597_vm9, %vm1595_vm8  ;;  %vm1605_vm5 = vcmp.eq.s32.totalorder %v1571_v21, %v3017_v7  ;;  %vm1602_vm9 = vcmp.eq.s32.totalorder %v1570_v25, %v3020_v8  ;;  %vm1604_vm7 = vcmp.eq.s32.totalorder %v1571_v21, %v3020_v8 }
 0xa94   :  { %vm1972_vm15 = vmpackc.low %vm1596_vm0, %vm1594_vm12 }
 0xa95   :  { %1969 = vmatpush1.bf16.msk.msra.mxu0 %vm1968_vm10, %v2253_v20  ;;  %2003 = vmatpush1.bf16.msk.msra.mxu1 %vm1968_vm10, %v2253_v20  ;;  %vm1974_vm1 = vmpackc.low %vm1601_vm14, %vm1599_vm13  ;;  %vm1607_vm10 = vcmp.eq.s32.totalorder %v1572_v26, %v3017_v7  ;;  %vm1606_vm13 = vcmp.eq.s32.totalorder %v1572_v26, %v3020_v8  ;;  %vm1608_vm14 = vcmp.eq.s32.totalorder %v1573_v27, %v3020_v8 }
 0xa96   :  { %1971 = vmatprep.subr.msk.bf16.mxu0 %vm1970_vm11, %v2253_v20  ;;  %1996 = vmatprep.subr.msk.bf16.mxu1 %vm1970_vm11, %v2253_v20  ;;  %vm1976_vm6 = vmpackc.low %vm1600_vm3, %vm1598_vm2  ;;  %vm1609_vm11 = vcmp.eq.s32.totalorder %v1573_v27, %v3017_v7 }
 0xa97   :  { %vm1978_vm8 = vmpackc.low %vm1605_vm5, %vm1603_vm4  ;;  %vm1610_vm4 = vcmp.eq.s32.totalorder %v1574_v28, %v3020_v8  ;;  %vm1612_vm5 = vcmp.eq.s32.totalorder %v1575_v29, %v3020_v8 }
 0xa98   :  { %vm1980_vm12 = vmpackc.low %vm1604_vm7, %vm1602_vm9 }
 0xa99   :  { %1973 = vmatpush1.bf16.msk.msra.mxu0 %vm1972_vm15, %v2253_v20  ;;  %2004 = vmatpush1.bf16.msk.msra.mxu1 %vm1972_vm15, %v2253_v20  ;;  %vm1982_vm0 = vmpackc.low %vm1609_vm11, %vm1607_vm10  ;;  %vm1611_vm15 = vcmp.eq.s32.totalorder %v1574_v28, %v3017_v7  ;;  %vm1614_vm10 = vcmp.eq.s32.totalorder %v1576_v30, %v3020_v8  ;;  %vm1616_vm11 = vcmp.eq.s32.totalorder %v1577_v31, %v3020_v8 }
 0xa9a   :  { %1975 = vmatprep.subr.msk.bf16.mxu0 %vm1974_vm1, %v2253_v20  ;;  %1997 = vmatprep.subr.msk.bf16.mxu1 %vm1974_vm1, %v2253_v20  ;;  %vm1613_vm1 = vcmp.eq.s32.totalorder %v1575_v29, %v3017_v7  ;;  %vm1984_vm2 = vmpackc.low %vm1608_vm14, %vm1606_vm13 }
 0xa9b   :  { %vm1986_vm3 = vmpackc.low %vm1613_vm1, %vm1611_vm15 }
 0xa9c   :  { %vm1988_vm9 = vmpackc.low %vm1612_vm5, %vm1610_vm4 }
 0xa9d   :  { %1977 = vmatpush1.bf16.msk.msra.mxu0 %vm1976_vm6, %v2253_v20  ;;  %2005 = vmatpush1.bf16.msk.msra.mxu1 %vm1976_vm6, %v2253_v20  ;;  %vm1615_vm6 = vcmp.eq.s32.totalorder %v1576_v30, %v3017_v7 }
 0xa9e   :  { %1979 = vmatprep.subr.msk.bf16.mxu0 %vm1978_vm8, %v2253_v20  ;;  %1998 = vmatprep.subr.msk.bf16.mxu1 %vm1978_vm8, %v2253_v20  ;;  %vm1617_vm8 = vcmp.eq.s32.totalorder %v1577_v31, %v3017_v7 }
 0xa9f   :  { %vm1990_vm7 = vmpackc.low %vm1617_vm8, %vm1615_vm6 }
 0xaa1   :  { %1981 = vmatpush1.bf16.msk.msra.mxu0 %vm1980_vm12, %v2253_v20  ;;  %2006 = vmatpush1.bf16.msk.msra.mxu1 %vm1980_vm12, %v2253_v20  ;;  %vm1992_vm12 = vmpackc.low %vm1616_vm11, %vm1614_vm10 }
 0xaa2   :  { %1983 = vmatprep.subr.msk.bf16.mxu0 %vm1982_vm0, %v2253_v20  ;;  %1999 = vmatprep.subr.msk.bf16.mxu1 %vm1982_vm0, %v2253_v20 }
 0xaa5   :  { %1985 = vmatpush1.bf16.msk.msra.mxu0 %vm1984_vm2, %v2253_v20  ;;  %2007 = vmatpush1.bf16.msk.msra.mxu1 %vm1984_vm2, %v2253_v20 }
 0xaa6   :  { %1987 = vmatprep.subr.msk.bf16.mxu0 %vm1986_vm3, %v2253_v20  ;;  %2000 = vmatprep.subr.msk.bf16.mxu1 %vm1986_vm3, %v2253_v20 }
 0xaa9   :  { %1989 = vmatpush1.bf16.msk.msra.mxu0 %vm1988_vm9, %v2253_v20  ;;  %2008 = vmatpush1.bf16.msk.msra.mxu1 %vm1988_vm9, %v2253_v20 }
 0xaaa   :  { %1991 = vmatprep.subr.msk.bf16.mxu0 %vm1990_vm7, %v2253_v20  ;;  %2001 = vmatprep.subr.msk.bf16.mxu1 %vm1990_vm7, %v2253_v20 }
 0xaad   :  { %1993 = vmatpush1.bf16.msk.msra.mxu0 %vm1992_vm12, %v2253_v20  ;;  %2009 = vmatpush1.bf16.msk.msra.mxu1 %vm1992_vm12, %v2253_v20 }
 0xab0   :  { %1747 = vmatmul.mubr.f32.vlgmr.msra.gmra.mrb[0].mxu0 %v3167_v49  ;;  %1753 = vmatmul.mubr.f32.vlgmr.msra.gmra.mrb[0].mxu1 %v3168_v18 }
 0xab1   :  { %1758 = vmatprep.mubr.f32.mxu1 %v2252_v6 }
 0xab4   :  { %1759 = vmatmul.mubr.f32.gmra.mrb[2].mxu1 %v2248_v13 }
 0xab5   :  { %2171 = shalt.err (!%p2168_p4)
}
 0xab6   :  { %s2172_s27 = scalar_lea.hbm %s3165_s4, 384 }
 0xab7   :  { %p2173_p5 = scmp.ne.s32.totalorder %s3165_s4, %s2172_s27  ;;  %p2176_p6 = scmp.lt.u32.totalorder %s2172_s27, %s3165_s4 }
 0xab9   :  { %p2178_p7 = pnand %p2176_p6, %p2173_p5 }
 0xabb   :  { %2181 = shalt.err (!%p2178_p7)
}
 0xabc   :  { %1853 = dma.vmem_to_hbm [thread:$0]  %s1848_s23, 384, %s3165_s4, [#allocation4], %s2246_s0, %s2246_s0, %s2247_s13   ;;  %v1828_v4 = vsub.f32 %v1561_v2, %v2999_v53  ;;  %v1829_v8 = vsub.f32 %v2999_v53, %v1562_v63 }
 0xabd   :  { %v1557_v13 = vld [vmem:[%s3163_s2] sm:$0x1]  ;;  %s2255_s2 = smov [#allocation8]  }
 0xabe   :  { %v1559_v24 = vceil.f32 %v1557_v13  ;;  %v1560_v32 = vfloor.f32 %v1557_v13  ;;  %s1860_s4 = sshll.u32 %s2255_s2, 4  ;;  %s1861_s4 = int_to_ptr.vmem [resolvable:$true] %s1860_s4 }
 0xabf   :  { %s2182_s11 = scalar_lea.vmem %s1861_s4, 16  ;;  %s2186_s12 = scalar_lea.vmem %s1861_s4, 32 }
 0xac0   :  { %v2016_v33 = vtrunc.f32 %v1559_v24  ;;  %v2018_v34 = vtrunc.f32 %v1560_v32  ;;  %v1826_v3 = vsub.f32 %v1559_v24, %v1557_v13  ;;  %v1827_v22 = vsub.f32 %v1557_v13, %v1560_v32  ;;  %p2183_p8 = scmp.ne.s32.totalorder %s1861_s4, %s2182_s11  ;;  %p2187_p9 = scmp.lt.s32.totalorder %s1861_s4, %s1861_s4 }
 0xac1   :  { %p2188_p10 = scmp.lt.s32.totalorder %s2186_s12, %s2182_s11 }
 0xac2   :  { %v2017_v35 = vcvt.f32.s32 %v2016_v33  ;;  %v2019_v36 = vcvt.f32.s32 %v2018_v34  ;;  %v1830_v23 = vmul.f32 %v1828_v4, %v1826_v3  ;;  %v1832_v27 = vmul.f32 %v1829_v8, %v1826_v3 }
 0xac3   :  { %v1835_v30 = vmul.f32 %v1828_v4, %v1827_v22  ;;  %v1838_v33 = vmul.f32 %v1829_v8, %v1827_v22  ;;  %p2189_p11 = por %p2188_p10, %p2187_p9 }
 0xac4   :  { %v1769_v37 = vrot.slane %v2017_v35, %v3009_v11  ;;  %v1783_v38 = vrot.slane %v2019_v36, %v3009_v11 }
 0xac5   :  { %p2190_p12 = pnand %p2189_p11, %p2183_p8 }
 0xac6   :  { %vm1770_vm0 = vcmp.eq.s32.totalorder %v2325_v5, %v1769_v37  ;;  %vm1771_vm13 = vcmp.eq.s32.totalorder %v2338_v9, %v1769_v37  ;;  %vm1784_vm14 = vcmp.eq.s32.totalorder %v2325_v5, %v1783_v38  ;;  %vm1785_vm15 = vcmp.eq.s32.totalorder %v2338_v9, %v1783_v38 }
 0xac7   :  { %v1956_v39 = vsel %vm1770_vm0, 1.0, %v2252_v6  ;;  %v1957_v40 = vsel %vm1771_vm13, 1.0, %v2252_v6  ;;  %vm1772_vm1 = vcmp.eq.s32.totalorder %v2341_v10, %v1769_v37  ;;  %v1959_v41 = vsel %vm1784_vm14, 1.0, %v2252_v6 }
 0xac8   :  { %v1960_v42 = vsel %vm1785_vm15, 1.0, %v2252_v6  ;;  %vm1786_vm2 = vcmp.eq.s32.totalorder %v2341_v10, %v1783_v38  ;;  %v1958_v9 = vsel %vm1772_vm1, 1.0, %v2252_v6 }
 0xac9   :  { %v1961_v18 = vsel %vm1786_vm2, 1.0, %v2252_v6 }
 0xb83   :  { %v1748_v43 = vpop.f32.mrb[0].mxu0  ;;  %v1754_v44 = vpop.f32.mrb[0].mxu1 }
 0xb84   :  { %v1793_v45 = vmul.f32 %v1956_v39, %v1748_v43  ;;  %v1794_v46 = vmul.f32 %v1957_v40, %v1754_v44  ;;  %v1750_v47 = vpop.f32.mrb[1].mxu0  ;;  %v1756_v5 = vpop.f32.mrb[1].mxu1 }
 0xb85   :  { %v1804_v48 = vmul.f32 %v1956_v39, %v1750_v47  ;;  %v1815_v49 = vmul.f32 %v1959_v41, %v1750_v47  ;;  %v1805_v50 = vmul.f32 %v1957_v40, %v1756_v5  ;;  %v1816_v51 = vmul.f32 %v1960_v42, %v1756_v5 }
 0xb86   :  { %v1796_v16 = vadd.f32 %v1794_v46, %v1793_v45 }
 0xb87   :  { %v1807_v19 = vadd.f32 %v1805_v50, %v1804_v48  ;;  %v1818_v54 = vadd.f32 %v1816_v51, %v1815_v49  ;;  %v1760_v55 = vpop.f32.mrb[2].mxu1 }
 0xb88   :  { %v1795_v56 = vmul.f32 %v1958_v9, %v1760_v55  ;;  %v1762_v57 = vpop.f32.mrb[3].mxu1 }
 0xb89   :  { %v1806_v14 = vmul.f32 %v1958_v9, %v1762_v57  ;;  %v1817_v10 = vmul.f32 %v1961_v18, %v1762_v57 }
 0xb8a   :  { %v1797_v58 = vadd.f32 %v1796_v16, %v1795_v56 }
 0xb8b   :  { %v1808_v59 = vadd.f32 %v1807_v19, %v1806_v14  ;;  %v1819_v60 = vadd.f32 %v1818_v54, %v1817_v10 }
 0xb8c   :  { %v1798_v61 = vrot.slane %v1797_v58, 4 }
 0xb8d   :  { %v1809_v62 = vrot.slane %v1808_v59, 4  ;;  %v1820_v52 = vrot.slane %v1819_v60, 4 }
 0xb8e   :  { %v1799_v12 = vadd.f32 %v1798_v61, %v1797_v58 }
 0xb8f   :  { %v1810_v11 = vadd.f32 %v1809_v62, %v1808_v59  ;;  %v1821_v0 = vadd.f32 %v1820_v52, %v1819_v60 }
 0xb90   :  { %v1800_v1 = vrot.slane %v1799_v12, 2 }
 0xb91   :  { %v1811_v6 = vrot.slane %v1810_v11, 2  ;;  %v1822_v7 = vrot.slane %v1821_v0, 2 }
 0xb92   :  { %v1801_v15 = vadd.f32 %v1800_v1, %v1799_v12 }
 0xb93   :  { %v1812_v17 = vadd.f32 %v1811_v6, %v1810_v11  ;;  %v1823_v20 = vadd.f32 %v1822_v7, %v1821_v0 }
 0xb94   :  { %v1802_v26 = vrot.slane %v1801_v15, 1 }
 0xb95   :  { %v1813_v25 = vrot.slane %v1812_v17, 1  ;;  %v1824_v21 = vrot.slane %v1823_v20, 1 }
 0xb96   :  { %v1803_v31 = vadd.f32 %v1802_v26, %v1801_v15 }
 0xb97   :  { %v1825_v28 = vadd.f32 %v1824_v21, %v1823_v20  ;;  %v1814_v29 = vadd.f32 %v1813_v25, %v1812_v17 }
 0xb98   :  { %v1839_v63 = vmul.f32 %v1838_v33, %v1803_v31 }
 0xb99   :  { %v1831_v2 = vmul.f32 %v1830_v23, %v1825_v28  ;;  %v1833_v24 = vmul.f32 %v1832_v27, %v1814_v29  ;;  %v1836_v35 = vmul.f32 %v1835_v30, %v1814_v29 }
 0xb9b   :  { %v1834_v34 = vadd.f32 %v1833_v24, %v1831_v2 }
 0xb9d   :  { %v1837_v53 = vadd.f32 %v1836_v35, %v1834_v34 }
 0xb9f   :  { %v1840_v36 = vadd.f32 %v1839_v63, %v1837_v53 }
 0xba1   :  { %1841 = vst [vmem:[#allocation8] sm:$0x1] %v1840_v36 }
 0xba2   :  { %2193 = shalt.err (!%p2190_p12)
}
 0xba3   :  { %s2194_s14 = scalar_lea.hbm %s3166_s5, 16 }
 0xba4   :  { %p2195_p13 = scmp.ne.s32.totalorder %s3166_s5, %s2194_s14  ;;  %p2198_p0 = scmp.lt.u32.totalorder %s2194_s14, %s3166_s5 }
 0xba6   :  { %p2200_p1 = pnand %p2198_p0, %p2195_p13 }
 0xba8   :  { %2203 = shalt.err (!%p2200_p1)
}
 0xba9   :  { %1863 = dma.vmem_to_hbm [thread:$0]  %s1861_s4, 16, %s3166_s5, [#allocation9]  }
 0xbaa   :  { %2224 = dma.done.wait [#allocation4], 384  }
 0xbab   :  { %2225 = vsyncadd [#allocation4], 4294966912 }
 0xbac   :  { %2226 = dma.done.wait [#allocation9], 16  }
 0xbad   :  { %2227 = vsyncadd [#allocation9], 4294967280 }
 0xbae   :  { %1870 = vsyncpa [#allocation3], 1 }
 0xbaf   :  { %1871 = vsyncpa [#allocation4], 1 }
 0xbb0   :  { %1872 = vsyncpa [#allocation9], 1 }
 0xbb1   :  { %1873 = vsyncpa [#allocation5], 1 }

</bundles_post_ra>
